<compile_context>
chip_gen: v6e
topology: v6e:2x2x1
jax: 0.10.0
libtpu: 0.0.40
codegen_flags: <defaults>
</compile_context>

<pallas_src>
import math
from functools import partial

import jax
import jax.numpy as jnp
from jax.experimental import pallas as pl
from jax.experimental.pallas import tpu as pltpu

_VMEM_LIMIT = 48 * 1024 * 1024   # explicit scoped-VMEM budget (< v7x 64 MiB physical)


# ----------------------------------------------------------------------------
# Kernel 1: multi-head self-attention + residual add   (xs1 = x + MHA(x, mask))
# ----------------------------------------------------------------------------
def _mha_residual_kernel(xq_ref, xkv_ref, mask_ref,
                         wq_ref, bq_ref, wk_ref, bk_ref, wv_ref, bv_ref,
                         wo_ref, bo_ref, o_ref, *, num_heads):
    xq = xq_ref[...]                                 # (tq, D) f32 query rows
    xkv = xkv_ref[...]                               # (T,  D) f32 full sequence
    D = xq.shape[-1]
    H = num_heads
    dh = D // H
    scale = 1.0 / math.sqrt(dh)

    xq_b = xq.astype(jnp.bfloat16)
    xkv_b = xkv.astype(jnp.bfloat16)

    # projections: full-D contractions on the MXU (bf16 in, f32 accumulate)
    q = jnp.dot(xq_b, wq_ref[...], preferred_element_type=jnp.float32) + bq_ref[...]
    k = jnp.dot(xkv_b, wk_ref[...], preferred_element_type=jnp.float32) + bk_ref[...]
    v = jnp.dot(xkv_b, wv_ref[...], preferred_element_type=jnp.float32) + bv_ref[...]

    # head-major (H, rows, dh) tensors; all heads batched in one dot_general
    qh = jnp.stack([q[:, h * dh:(h + 1) * dh] for h in range(H)],
                   axis=0).astype(jnp.bfloat16)       # (H, tq, dh)
    kh = jnp.stack([k[:, h * dh:(h + 1) * dh] for h in range(H)],
                   axis=0).astype(jnp.bfloat16)       # (H, T, dh)
    vh = jnp.stack([v[:, h * dh:(h + 1) * dh] for h in range(H)],
                   axis=0).astype(jnp.bfloat16)       # (H, T, dh)

    scores = jnp.einsum("hqc,hkc->hqk", qh, kh,
                        preferred_element_type=jnp.float32) * scale   # (H,tq,T)
    bias = jnp.where(mask_ref[...] > 0, 0.0, -1e30)                   # (1, T)
    scores = scores + bias                       # key mask hoisted out of heads

    smax = jnp.max(scores, axis=-1, keepdims=True)
    p = jnp.exp(scores - smax)
    p = p * pl.reciprocal(jnp.sum(p, axis=-1, keepdims=True), approx=True)

    ctx = jnp.einsum("hqk,hkc->hqc", p.astype(jnp.bfloat16), vh,
                     preferred_element_type=jnp.float32)              # (H,tq,dh)
    ctx_flat = jnp.concatenate([ctx[h] for h in range(H)], axis=-1)   # (tq, D)

    # single full-D output projection
    att = jnp.dot(ctx_flat.astype(jnp.bfloat16), wo_ref[...],
                  preferred_element_type=jnp.float32) + bo_ref[...]
    o_ref[...] = xq + att                        # residual (dropout = identity)


def mha_residual(x, mask, p):
    B, T, D = x.shape
    tq = 128 if (T % 128 == 0) else T            # query tile
    nq = T // tq

    xq_spec = pl.BlockSpec((None, tq, D), lambda b, qi: (b, qi, 0))
    xkv_spec = pl.BlockSpec((None, T, D), lambda b, qi: (b, 0, 0))
    msk_spec = pl.BlockSpec((None, 1, T), lambda b, qi: (b, 0, 0))
    mat = pl.BlockSpec((D, D), lambda b, qi: (0, 0))
    vec = pl.BlockSpec((1, D), lambda b, qi: (0, 0))

    bf = lambda a: a.astype(jnp.bfloat16)
    return pl.pallas_call(
        partial(_mha_residual_kernel, num_heads=p["num_heads"]),
        out_shape=jax.ShapeDtypeStruct((B, T, D), jnp.float32),
        grid=(B, nq),
        in_specs=[xq_spec, xkv_spec, msk_spec,
                  mat, vec, mat, vec, mat, vec, mat, vec],
        out_specs=pl.BlockSpec((None, tq, D), lambda b, qi: (b, qi, 0)),
        compiler_params=pltpu.CompilerParams(
            dimension_semantics=("parallel", "parallel"),
            vmem_limit_bytes=_VMEM_LIMIT),
    )(x, x, mask, bf(p["wq"]), p["bq"], bf(p["wk"]), p["bk"],
      bf(p["wv"]), p["bv"], bf(p["wo"]), p["bo"])


# ----------------------------------------------------------------------------
# Kernel 2: fused ConvolutionModule (pw1+GLU -> strided depthwise conv w/ folded
#           BN -> SiLU -> pw2) + AvgPool residual + FFN(0.5x) + LayerNorm
# ----------------------------------------------------------------------------
def _fused_downsample_kernel(xs1_ref, w_pw1_ref, b_pw1_ref, w_dw_ref, b_dw_ref,
                             w_pw2_ref, b_pw2_ref, w_ff1_ref, b_ff1_ref,
                             w_ff2_ref, b_ff2_ref, ln_g_ref, ln_b_ref,
                             o_ref, ypad_ref,
                             *, seq_len, out_len, stride, kernel_size, y_off,
                             ln_eps):
    xs1 = xs1_ref[...]                           # (Tp, D) f32, zero rows >= seq_len
    D = xs1.shape[-1]

    # pointwise conv 1 (D -> 2D) + GLU
    h = jnp.dot(xs1.astype(jnp.bfloat16), w_pw1_ref[...],
                preferred_element_type=jnp.float32) + b_pw1_ref[...]
    y = h[:, :D] * jax.nn.sigmoid(h[:, D:])      # (Tp, D)

    # zero-padded copy of y in VMEM scratch: valid rows [0, seq_len) at y_off
    ypad_ref[...] = jnp.zeros_like(ypad_ref)
    ypad_ref[pl.ds(y_off, seq_len), :] = y[:seq_len, :]

    # strided depthwise conv; BatchNorm (eval) already folded into (w_dw, b_dw)
    pad = (kernel_size - 1) // 2
    w_dw = w_dw_ref[...]                         # (K, D)
    dw = jnp.zeros((out_len, D), jnp.float32)
    for k_tap in range(kernel_size):             # static unroll, K is small
        start = y_off - pad + k_tap
        tap = ypad_ref[pl.ds(start, out_len, stride=stride), :]
        dw = dw + tap * w_dw[k_tap:k_tap + 1, :]
    dw = dw + b_dw_ref[...]

    hb = dw * jax.nn.sigmoid(dw)                 # SiLU / Swish
    conv_out = jnp.dot(hb.astype(jnp.bfloat16), w_pw2_ref[...],
                       preferred_element_type=jnp.float32) + b_pw2_ref[...]

    # AvgPool1d(kernel=stride, stride=stride, ceil_mode=True,
    #           count_include_pad=False) of the pre-conv residual
    pooled = jnp.zeros((out_len, D), jnp.float32)
    for s in range(stride):
        pooled = pooled + xs1_ref[pl.ds(s, out_len, stride=stride), :]
    o_idx = jax.lax.broadcasted_iota(jnp.int32, (out_len, 1), 0)
    cnt = jnp.minimum(stride, seq_len - o_idx * stride).astype(jnp.float32)
    pooled = pooled / cnt

    xs = pooled + conv_out                       # residual + conv_downsample

    # feed-forward, half-residual
    ff = jnp.dot(xs.astype(jnp.bfloat16), w_ff1_ref[...],
                 preferred_element_type=jnp.float32) + b_ff1_ref[...]
    ff = jnp.maximum(ff, 0.0)
    ff = jnp.dot(ff.astype(jnp.bfloat16), w_ff2_ref[...],
                 preferred_element_type=jnp.float32) + b_ff2_ref[...]
    xs = xs + 0.5 * ff

    # LayerNorm over channels (f32)
    mu = jnp.mean(xs, axis=-1, keepdims=True)
    var = jnp.mean((xs - mu) ** 2, axis=-1, keepdims=True)
    o_ref[...] = (xs - mu) * jax.lax.rsqrt(var + ln_eps) * ln_g_ref[...] + ln_b_ref[...]


def fused_downsample(xs1_p, w_dwf, b_dwf, p, *, seq_len):
    B, Tp, D = xs1_p.shape
    stride, K = p["stride"], p["cnn_kernel"]
    To = Tp // stride
    Dff = p["w_ff1"].shape[1]
    pad = (K - 1) // 2
    y_off = ((pad + 7) // 8) * 8                 # sublane-aligned y placement
    need = max(y_off + seq_len, y_off - pad + (To - 1) * stride + K)
    t_scratch = ((need + 7) // 8) * 8

    act = pl.BlockSpec((None, Tp, D), lambda b: (b, 0, 0))
    out = pl.BlockSpec((None, To, D), lambda b: (b, 0, 0))
    c = lambda shape: pl.BlockSpec(shape, lambda b: (0, 0))

    bf = lambda a: a.astype(jnp.bfloat16)
    return pl.pallas_call(
        partial(_fused_downsample_kernel, seq_len=seq_len, out_len=To,
                stride=stride, kernel_size=K, y_off=y_off, ln_eps=1e-5),
        out_shape=jax.ShapeDtypeStruct((B, To, D), jnp.float32),
        grid=(B,),
        in_specs=[act,
                  c((D, 2 * D)), c((1, 2 * D)),
                  c((K, D)), c((1, D)),
                  c((D, D)), c((1, D)),
                  c((D, Dff)), c((1, Dff)),
                  c((Dff, D)), c((1, D)),
                  c((1, D)), c((1, D))],
        out_specs=out,
        scratch_shapes=[pltpu.VMEM((t_scratch, D), jnp.float32)],
        compiler_params=pltpu.CompilerParams(
            dimension_semantics=("parallel",),
            vmem_limit_bytes=_VMEM_LIMIT),
    )(xs1_p, bf(p["w_pw1"]), p["b_pw1"], w_dwf, b_dwf,
      bf(p["w_pw2"]), p["b_pw2"], bf(p["w_ff1"]), p["b_ff1"],
      bf(p["w_ff2"]), p["b_ff2"], p["ln_g"], p["ln_b"])


# ----------------------------------------------------------------------------
# Full forward
# ----------------------------------------------------------------------------
def downsample_layer_forward(x, mask, p):
    # NOTE: best TPU layout when D (and d_ff) are multiples of 128 (lane-dense);
    #       smaller D still works functionally (full-dim blocks).
    B, T, D = x.shape
    stride = p["stride"]
    To = -(-T // stride)                         # ceil(T / stride)
    Tp = To * stride

    xs1 = mha_residual(x, mask, p)               # x + MHA(x, mask)

    # pad time with zero rows up to a multiple of `stride` (ceil-mode pooling)
    if Tp > T:
        xs1 = jnp.pad(xs1, ((0, 0), (0, Tp - T), (0, 0)))

    # fold eval-mode BatchNorm into the depthwise conv weights/bias
    w_dwf = (p["w_dw"] * p["bn_scale"]).astype(jnp.float32)
    b_dwf = (p["b_dw"] * p["bn_scale"] + p["bn_shift"]).astype(jnp.float32)

    out = fused_downsample(xs1, w_dwf, b_dwf, p, seq_len=T)
    new_mask = mask[:, :, ::stride]
    return out, new_mask


# ----------------------------------------------------------------------------
# deterministic parameter init + pure-JAX f32 reference
# ----------------------------------------------------------------------------
def init_params(key, D, H, K, d_ff, stride):
    ks = jax.random.split(key, 22)
    w = lambda k, s: (0.05 * jax.random.normal(k, s)).astype(jnp.float32)
    p = dict(
        num_heads=H, cnn_kernel=K, stride=stride,
        wq=w(ks[0], (D, D)), bq=w(ks[1], (1, D)),
        wk=w(ks[2], (D, D)), bk=w(ks[3], (1, D)),
        wv=w(ks[4], (D, D)), bv=w(ks[5], (1, D)),
        wo=w(ks[6], (D, D)), bo=w(ks[7], (1, D)),
        w_pw1=w(ks[8], (D, 2 * D)), b_pw1=w(ks[9], (1, 2 * D)),
        w_dw=w(ks[10], (K, D)), b_dw=w(ks[11], (1, D)),
        w_pw2=w(ks[12], (D, D)), b_pw2=w(ks[13], (1, D)),
        w_ff1=w(ks[14], (D, d_ff)), b_ff1=w(ks[15], (1, d_ff)),
        w_ff2=w(ks[16], (d_ff, D)), b_ff2=w(ks[17], (1, D)),
        ln_g=1.0 + w(ks[18], (1, D)), ln_b=w(ks[19], (1, D)),
    )
    bn_gamma, bn_beta = 1.0 + w(ks[20], (1, D)), w(ks[21], (1, D))
    # BatchNorm1d eval-mode with running_mean=0, running_var=1
    p["bn_scale"] = bn_gamma / jnp.sqrt(1.0 + 1e-5)
    p["bn_shift"] = bn_beta
    return p


def reference_forward(x, mask, p):
    B, T, D = x.shape
    H = p["num_heads"]; dh = D // H
    q = x @ p["wq"] + p["bq"]; k = x @ p["wk"] + p["bk"]; v = x @ p["wv"] + p["bv"]
    heads = lambda a: a.reshape(B, T, H, dh).transpose(0, 2, 1, 3)
    qh, kh, vh = heads(q), heads(k), heads(v)
    scores = jnp.einsum("bhqd,bhkd->bhqk", qh, kh) / math.sqrt(dh)
    scores = jnp.where(mask[:, :, None, :] > 0, scores, -1e30)
    ctx = jnp.einsum("bhqk,bhkd->bhqd", jax.nn.softmax(scores, -1), vh)
    ctx = ctx.transpose(0, 2, 1, 3).reshape(B, T, D)
    xs1 = x + ctx @ p["wo"] + p["bo"]
    h = xs1 @ p["w_pw1"] + p["b_pw1"]
    y = h[..., :D] * jax.nn.sigmoid(h[..., D:])
    K, stride = p["cnn_kernel"], p["stride"]; pad = (K - 1) // 2
    To = -(-T // stride)
    y_pad = jnp.pad(y, ((0, 0), (pad, pad), (0, 0)))
    dw = sum(y_pad[:, k: k + stride * (To - 1) + 1: stride, :] * p["w_dw"][k]
             for k in range(K)) + p["b_dw"]
    hb = dw * p["bn_scale"] + p["bn_shift"]
    hb = hb * jax.nn.sigmoid(hb)
    conv_out = hb @ p["w_pw2"] + p["b_pw2"]
    pad_T = To * stride - T
    xs1_pad = jnp.pad(xs1, ((0, 0), (0, pad_T), (0, 0)))
    summ = sum(xs1_pad[:, s::stride, :] for s in range(stride))
    counts = jnp.minimum(stride, T - jnp.arange(To) * stride).astype(jnp.float32)
    xs = summ / counts[None, :, None] + conv_out
    ff = jnp.maximum(xs @ p["w_ff1"] + p["b_ff1"], 0.0) @ p["w_ff2"] + p["b_ff2"]
    xs = xs + 0.5 * ff
    mu = xs.mean(-1, keepdims=True); var = ((xs - mu) ** 2).mean(-1, keepdims=True)
    out = (xs - mu) / jnp.sqrt(var + 1e-5) * p["ln_g"] + p["ln_b"]
    return out, mask[:, :, ::stride]


if __name__ == "__main__":
    B, T, D = 2, 16, 128          # D lane-dense (multiple of 128)
    H, K, stride = 4, 3, 2
    d_ff = D                      # PositionwiseFeedForward(out_size, out_size)

    key = jax.random.PRNGKey(0)
    kx, kp = jax.random.split(key)
    x = jax.random.normal(kx, (B, T, D), dtype=jnp.float32)
    mask = jnp.ones((B, 1, T), dtype=jnp.float32)
    mask = mask.at[1, 0, 12:].set(0.0)          # exercise key masking
    params = init_params(kp, D, H, K, d_ff, stride)

    out, new_mask = downsample_layer_forward(x, mask, params)
    out = jax.block_until_ready(out)

    ref_out, ref_mask = reference_forward(x, mask, params)
    assert out.shape == (B, -(-T // stride), D)
    assert new_mask.shape == ref_mask.shape
    max_err = float(jnp.max(jnp.abs(out - ref_out)))
    # bf16 MXU operands (f32 accumulation) vs f32 reference -> loosened tolerance
    assert jnp.allclose(out, ref_out, atol=5e-2, rtol=5e-2), max_err
    print("KERNEL_OK")
</pallas_src>

<mosaic_0001>
module attributes {stable_mosaic.version = 11 : i64} {
  func.func @_mha_residual_kernel(%arg0: i32, %arg1: i32, %arg2: memref<1x16x128xf32, #tpu.memory_space<vmem>>, %arg3: memref<1x16x128xf32, #tpu.memory_space<vmem>>, %arg4: memref<1x1x16xf32, #tpu.memory_space<vmem>>, %arg5: memref<128x128xbf16, #tpu.memory_space<vmem>>, %arg6: memref<1x128xf32, #tpu.memory_space<vmem>>, %arg7: memref<128x128xbf16, #tpu.memory_space<vmem>>, %arg8: memref<1x128xf32, #tpu.memory_space<vmem>>, %arg9: memref<128x128xbf16, #tpu.memory_space<vmem>>, %arg10: memref<1x128xf32, #tpu.memory_space<vmem>>, %arg11: memref<128x128xbf16, #tpu.memory_space<vmem>>, %arg12: memref<1x128xf32, #tpu.memory_space<vmem>>, %arg13: memref<1x16x128xf32, #tpu.memory_space<vmem>>) attributes {dimension_semantics = [#tpu.dimension_semantics<parallel>, #tpu.dimension_semantics<parallel>], iteration_bounds = array<i64: 2, 1>, scalar_prefetch = 0 : i64, scratch_operands = 0 : i64, tpu.core_type = #tpu.core_type<tc>, window_params = [{transform_indices = @transform_0, window_bounds = array<i64: 1, 16, 128>}, {transform_indices = @transform_1, window_bounds = array<i64: 1, 16, 128>}, {transform_indices = @transform_2, window_bounds = array<i64: 1, 1, 16>}, {pipeline_mode = #tpu.pipeline_mode<synchronous>, transform_indices = @transform_3, window_bounds = array<i64: 128, 128>}, {pipeline_mode = #tpu.pipeline_mode<synchronous>, transform_indices = @transform_4, window_bounds = array<i64: 1, 128>}, {pipeline_mode = #tpu.pipeline_mode<synchronous>, transform_indices = @transform_5, window_bounds = array<i64: 128, 128>}, {pipeline_mode = #tpu.pipeline_mode<synchronous>, transform_indices = @transform_6, window_bounds = array<i64: 1, 128>}, {pipeline_mode = #tpu.pipeline_mode<synchronous>, transform_indices = @transform_7, window_bounds = array<i64: 128, 128>}, {pipeline_mode = #tpu.pipeline_mode<synchronous>, transform_indices = @transform_8, window_bounds = array<i64: 1, 128>}, {pipeline_mode = #tpu.pipeline_mode<synchronous>, transform_indices = @transform_9, window_bounds = array<i64: 128, 128>}, {pipeline_mode = #tpu.pipeline_mode<synchronous>, transform_indices = @transform_10, window_bounds = array<i64: 1, 128>}, {transform_indices = @transform_11, window_bounds = array<i64: 1, 16, 128>}]} {
    %c0 = arith.constant 0 : index
    %c0_0 = arith.constant 0 : index
    %c0_1 = arith.constant 0 : index
    %0 = vector.load %arg2[%c0, %c0_0, %c0_1] : memref<1x16x128xf32, #tpu.memory_space<vmem>>, vector<1x16x128xf32>
    %1 = vector.shape_cast %0 : vector<1x16x128xf32> to vector<16x128xf32>
    %c0_2 = arith.constant 0 : index
    %c0_3 = arith.constant 0 : index
    %c0_4 = arith.constant 0 : index
    %2 = vector.load %arg3[%c0_2, %c0_3, %c0_4] : memref<1x16x128xf32, #tpu.memory_space<vmem>>, vector<1x16x128xf32>
    %3 = vector.shape_cast %2 : vector<1x16x128xf32> to vector<16x128xf32>
    %4 = arith.truncf %1 : vector<16x128xf32> to vector<16x128xbf16>
    %5 = arith.truncf %3 : vector<16x128xf32> to vector<16x128xbf16>
    %c0_5 = arith.constant 0 : index
    %c0_6 = arith.constant 0 : index
    %6 = vector.load %arg5[%c0_5, %c0_6] : memref<128x128xbf16, #tpu.memory_space<vmem>>, vector<128x128xbf16>
    %cst = arith.constant dense<0.000000e+00> : vector<16x128xf32>
    %7 = tpu.matmul %4, %6, %cst {dimension_numbers = #tpu.dot_dimension_numbers<[1], [0], [0], [1], [0, 0, 1, 1], [], []>} : vector<16x128xbf16>, vector<128x128xbf16>, vector<16x128xf32> -> vector<16x128xf32>
    %c0_7 = arith.constant 0 : index
    %c0_8 = arith.constant 0 : index
    %8 = vector.load %arg6[%c0_7, %c0_8] : memref<1x128xf32, #tpu.memory_space<vmem>>, vector<1x128xf32>
    %9 = vector.broadcast %8 : vector<1x128xf32> to vector<16x128xf32>
    %10 = arith.addf %7, %9 : vector<16x128xf32>
    %c0_9 = arith.constant 0 : index
    %c0_10 = arith.constant 0 : index
    %11 = vector.load %arg7[%c0_9, %c0_10] : memref<128x128xbf16, #tpu.memory_space<vmem>>, vector<128x128xbf16>
    %cst_11 = arith.constant dense<0.000000e+00> : vector<16x128xf32>
    %12 = tpu.matmul %5, %11, %cst_11 {dimension_numbers = #tpu.dot_dimension_numbers<[1], [0], [0], [1], [0, 0, 1, 1], [], []>} : vector<16x128xbf16>, vector<128x128xbf16>, vector<16x128xf32> -> vector<16x128xf32>
    %c0_12 = arith.constant 0 : index
    %c0_13 = arith.constant 0 : index
    %13 = vector.load %arg8[%c0_12, %c0_13] : memref<1x128xf32, #tpu.memory_space<vmem>>, vector<1x128xf32>
    %14 = vector.broadcast %13 : vector<1x128xf32> to vector<16x128xf32>
    %15 = arith.addf %12, %14 : vector<16x128xf32>
    %c0_14 = arith.constant 0 : index
    %c0_15 = arith.constant 0 : index
    %16 = vector.load %arg9[%c0_14, %c0_15] : memref<128x128xbf16, #tpu.memory_space<vmem>>, vector<128x128xbf16>
    %cst_16 = arith.constant dense<0.000000e+00> : vector<16x128xf32>
    %17 = tpu.matmul %5, %16, %cst_16 {dimension_numbers = #tpu.dot_dimension_numbers<[1], [0], [0], [1], [0, 0, 1, 1], [], []>} : vector<16x128xbf16>, vector<128x128xbf16>, vector<16x128xf32> -> vector<16x128xf32>
    %c0_17 = arith.constant 0 : index
    %c0_18 = arith.constant 0 : index
    %18 = vector.load %arg10[%c0_17, %c0_18] : memref<1x128xf32, #tpu.memory_space<vmem>>, vector<1x128xf32>
    %19 = vector.broadcast %18 : vector<1x128xf32> to vector<16x128xf32>
    %20 = arith.addf %17, %19 : vector<16x128xf32>
    %21 = vector.extract_strided_slice %10 {offsets = [0, 0], sizes = [16, 32], strides = [1, 1]} : vector<16x128xf32> to vector<16x32xf32>
    %22 = vector.extract_strided_slice %10 {offsets = [0, 32], sizes = [16, 32], strides = [1, 1]} : vector<16x128xf32> to vector<16x32xf32>
    %23 = vector.extract_strided_slice %10 {offsets = [0, 64], sizes = [16, 32], strides = [1, 1]} : vector<16x128xf32> to vector<16x32xf32>
    %24 = vector.extract_strided_slice %10 {offsets = [0, 96], sizes = [16, 32], strides = [1, 1]} : vector<16x128xf32> to vector<16x32xf32>
    %25 = vector.shape_cast %21 : vector<16x32xf32> to vector<1x16x32xf32>
    %26 = vector.shape_cast %22 : vector<16x32xf32> to vector<1x16x32xf32>
    %27 = vector.shape_cast %23 : vector<16x32xf32> to vector<1x16x32xf32>
    %28 = vector.shape_cast %24 : vector<16x32xf32> to vector<1x16x32xf32>
    %29 = tpu.concatenate %25, %26, %27, %28 in 0 : vector<1x16x32xf32>, vector<1x16x32xf32>, vector<1x16x32xf32>, vector<1x16x32xf32> -> vector<4x16x32xf32>
    %30 = arith.truncf %29 : vector<4x16x32xf32> to vector<4x16x32xbf16>
    %31 = vector.extract_strided_slice %15 {offsets = [0, 0], sizes = [16, 32], strides = [1, 1]} : vector<16x128xf32> to vector<16x32xf32>
    %32 = vector.extract_strided_slice %15 {offsets = [0, 32], sizes = [16, 32], strides = [1, 1]} : vector<16x128xf32> to vector<16x32xf32>
    %33 = vector.extract_strided_slice %15 {offsets = [0, 64], sizes = [16, 32], strides = [1, 1]} : vector<16x128xf32> to vector<16x32xf32>
    %34 = vector.extract_strided_slice %15 {offsets = [0, 96], sizes = [16, 32], strides = [1, 1]} : vector<16x128xf32> to vector<16x32xf32>
    %35 = vector.shape_cast %31 : vector<16x32xf32> to vector<1x16x32xf32>
    %36 = vector.shape_cast %32 : vector<16x32xf32> to vector<1x16x32xf32>
    %37 = vector.shape_cast %33 : vector<16x32xf32> to vector<1x16x32xf32>
    %38 = vector.shape_cast %34 : vector<16x32xf32> to vector<1x16x32xf32>
    %39 = tpu.concatenate %35, %36, %37, %38 in 0 : vector<1x16x32xf32>, vector<1x16x32xf32>, vector<1x16x32xf32>, vector<1x16x32xf32> -> vector<4x16x32xf32>
    %40 = arith.truncf %39 : vector<4x16x32xf32> to vector<4x16x32xbf16>
    %41 = vector.extract_strided_slice %20 {offsets = [0, 0], sizes = [16, 32], strides = [1, 1]} : vector<16x128xf32> to vector<16x32xf32>
    %42 = vector.extract_strided_slice %20 {offsets = [0, 32], sizes = [16, 32], strides = [1, 1]} : vector<16x128xf32> to vector<16x32xf32>
    %43 = vector.extract_strided_slice %20 {offsets = [0, 64], sizes = [16, 32], strides = [1, 1]} : vector<16x128xf32> to vector<16x32xf32>
    %44 = vector.extract_strided_slice %20 {offsets = [0, 96], sizes = [16, 32], strides = [1, 1]} : vector<16x128xf32> to vector<16x32xf32>
    %45 = vector.shape_cast %41 : vector<16x32xf32> to vector<1x16x32xf32>
    %46 = vector.shape_cast %42 : vector<16x32xf32> to vector<1x16x32xf32>
    %47 = vector.shape_cast %43 : vector<16x32xf32> to vector<1x16x32xf32>
    %48 = vector.shape_cast %44 : vector<16x32xf32> to vector<1x16x32xf32>
    %49 = tpu.concatenate %45, %46, %47, %48 in 0 : vector<1x16x32xf32>, vector<1x16x32xf32>, vector<1x16x32xf32>, vector<1x16x32xf32> -> vector<4x16x32xf32>
    %50 = arith.truncf %49 : vector<4x16x32xf32> to vector<4x16x32xbf16>
    "tpu.trace_start"() <{level = 10 : i32, message = "hqc,hkc->hqk"}> : () -> ()
    %cst_19 = arith.constant dense<0.000000e+00> : vector<4x16x16xf32>
    %51 = tpu.matmul %30, %40, %cst_19 {dimension_numbers = #tpu.dot_dimension_numbers<[2], [2], [1], [1], [0, 0, 0, 1, 1, 1], [0], [0]>} : vector<4x16x32xbf16>, vector<4x16x32xbf16>, vector<4x16x16xf32> -> vector<4x16x16xf32>
    "tpu.trace_stop"() : () -> ()
    %cst_20 = arith.constant 0.176776692 : f32
    %52 = vector.broadcast %cst_20 : f32 to vector<4x16x16xf32>
    %53 = arith.mulf %51, %52 : vector<4x16x16xf32>
    %c0_21 = arith.constant 0 : index
    %c0_22 = arith.constant 0 : index
    %c0_23 = arith.constant 0 : index
    %54 = vector.load %arg4[%c0_21, %c0_22, %c0_23] : memref<1x1x16xf32, #tpu.memory_space<vmem>>, vector<1x1x16xf32>
    %55 = vector.shape_cast %54 : vector<1x1x16xf32> to vector<1x16xf32>
    %cst_24 = arith.constant 0.000000e+00 : f32
    %56 = vector.broadcast %cst_24 : f32 to vector<1x16xf32>
    %57 = arith.cmpf ogt, %55, %56 : vector<1x16xf32>
    %cst_25 = arith.constant 0.000000e+00 : f32
    %cst_26 = arith.constant -1.000000e+30 : f32
    %58 = vector.broadcast %cst_25 : f32 to vector<1x16xf32>
    %59 = vector.broadcast %cst_26 : f32 to vector<1x16xf32>
    %60 = arith.select %57, %58, %59 : vector<1x16xi1>, vector<1x16xf32>
    %61 = vector.shape_cast %60 : vector<1x16xf32> to vector<1x1x16xf32>
    %62 = vector.broadcast %61 : vector<1x1x16xf32> to vector<4x16x16xf32>
    %63 = arith.addf %53, %62 : vector<4x16x16xf32>
    %cst_27 = arith.constant dense<0xFF800000> : vector<4x16xf32>
    %64 = vector.multi_reduction <maximumf>, %63, %cst_27 [2] : vector<4x16x16xf32> to vector<4x16xf32>
    %65 = vector.shape_cast %64 : vector<4x16xf32> to vector<4x16x1xf32>
    %66 = vector.broadcast %65 : vector<4x16x1xf32> to vector<4x16x16xf32>
    %67 = arith.subf %63, %66 : vector<4x16x16xf32>
    %68 = math.exp %67 : vector<4x16x16xf32>
    %cst_28 = arith.constant dense<0.000000e+00> : vector<4x16xf32>
    %69 = vector.multi_reduction <add>, %68, %cst_28 [2] : vector<4x16x16xf32> to vector<4x16xf32>
    %70 = vector.shape_cast %69 : vector<4x16xf32> to vector<4x16x1xf32>
    %71 = tpu.reciprocal %70 {approx = true} : vector<4x16x1xf32> -> vector<4x16x1xf32>
    %72 = vector.broadcast %71 : vector<4x16x1xf32> to vector<4x16x16xf32>
    %73 = arith.mulf %68, %72 : vector<4x16x16xf32>
    %74 = arith.truncf %73 : vector<4x16x16xf32> to vector<4x16x16xbf16>
    "tpu.trace_start"() <{level = 10 : i32, message = "hqk,hkc->hqc"}> : () -> ()
    %cst_29 = arith.constant dense<0.000000e+00> : vector<4x16x32xf32>
    %75 = tpu.matmul %74, %50, %cst_29 {dimension_numbers = #tpu.dot_dimension_numbers<[2], [1], [1], [2], [0, 0, 0, 1, 1, 2], [0], [0]>} : vector<4x16x16xbf16>, vector<4x16x32xbf16>, vector<4x16x32xf32> -> vector<4x16x32xf32>
    "tpu.trace_stop"() : () -> ()
    %76 = vector.extract_strided_slice %75 {offsets = [0, 0, 0], sizes = [1, 16, 32], strides = [1, 1, 1]} : vector<4x16x32xf32> to vector<1x16x32xf32>
    %77 = vector.shape_cast %76 : vector<1x16x32xf32> to vector<16x32xf32>
    %78 = vector.extract_strided_slice %75 {offsets = [1, 0, 0], sizes = [1, 16, 32], strides = [1, 1, 1]} : vector<4x16x32xf32> to vector<1x16x32xf32>
    %79 = vector.shape_cast %78 : vector<1x16x32xf32> to vector<16x32xf32>
    %80 = vector.extract_strided_slice %75 {offsets = [2, 0, 0], sizes = [1, 16, 32], strides = [1, 1, 1]} : vector<4x16x32xf32> to vector<1x16x32xf32>
    %81 = vector.shape_cast %80 : vector<1x16x32xf32> to vector<16x32xf32>
    %82 = vector.extract_strided_slice %75 {offsets = [3, 0, 0], sizes = [1, 16, 32], strides = [1, 1, 1]} : vector<4x16x32xf32> to vector<1x16x32xf32>
    %83 = vector.shape_cast %82 : vector<1x16x32xf32> to vector<16x32xf32>
    %84 = tpu.concatenate %77, %79, %81, %83 in 1 : vector<16x32xf32>, vector<16x32xf32>, vector<16x32xf32>, vector<16x32xf32> -> vector<16x128xf32>
    %85 = arith.truncf %84 : vector<16x128xf32> to vector<16x128xbf16>
    %c0_30 = arith.constant 0 : index
    %c0_31 = arith.constant 0 : index
    %86 = vector.load %arg11[%c0_30, %c0_31] : memref<128x128xbf16, #tpu.memory_space<vmem>>, vector<128x128xbf16>
    %cst_32 = arith.constant dense<0.000000e+00> : vector<16x128xf32>
    %87 = tpu.matmul %85, %86, %cst_32 {dimension_numbers = #tpu.dot_dimension_numbers<[1], [0], [0], [1], [0, 0, 1, 1], [], []>} : vector<16x128xbf16>, vector<128x128xbf16>, vector<16x128xf32> -> vector<16x128xf32>
    %c0_33 = arith.constant 0 : index
    %c0_34 = arith.constant 0 : index
    %88 = vector.load %arg12[%c0_33, %c0_34] : memref<1x128xf32, #tpu.memory_space<vmem>>, vector<1x128xf32>
    %89 = vector.broadcast %88 : vector<1x128xf32> to vector<16x128xf32>
    %90 = arith.addf %87, %89 : vector<16x128xf32>
    %91 = arith.addf %1, %90 : vector<16x128xf32>
    %c0_35 = arith.constant 0 : index
    %c0_36 = arith.constant 0 : index
    %c0_37 = arith.constant 0 : index
    %92 = vector.load %arg13[%c0_35, %c0_36, %c0_37] : memref<1x16x128xf32, #tpu.memory_space<vmem>>, vector<1x16x128xf32>
    %93 = vector.shape_cast %92 : vector<1x16x128xf32> to vector<16x128xf32>
    %94 = vector.shape_cast %91 : vector<16x128xf32> to vector<1x16x128xf32>
    tpu.vector_store %arg13[%c0_35, %c0_36, %c0_37], %94 {strides = array<i32>} : memref<1x16x128xf32, #tpu.memory_space<vmem>>, vector<1x16x128xf32>,
    return
  }
  func.func @transform_0(%arg0: i32, %arg1: i32) -> (i32, i32, i32) {
    %c0_i32 = arith.constant 0 : i32
    %c0_i32_0 = arith.constant 0 : i32
    return %arg0, %arg1, %c0_i32 : i32, i32, i32
  }
  func.func @transform_1(%arg0: i32, %arg1: i32) -> (i32, i32, i32) {
    %c0_i32 = arith.constant 0 : i32
    %c0_i32_0 = arith.constant 0 : i32
    %c0_i32_1 = arith.constant 0 : i32
    return %arg0, %c0_i32, %c0_i32_0 : i32, i32, i32
  }
  func.func @transform_2(%arg0: i32, %arg1: i32) -> (i32, i32, i32) {
    %c0_i32 = arith.constant 0 : i32
    %c0_i32_0 = arith.constant 0 : i32
    %c0_i32_1 = arith.constant 0 : i32
    return %arg0, %c0_i32, %c0_i32_0 : i32, i32, i32
  }
  func.func @transform_3(%arg0: i32, %arg1: i32) -> (i32, i32) {
    %c0_i32 = arith.constant 0 : i32
    %c0_i32_0 = arith.constant 0 : i32
    %c0_i32_1 = arith.constant 0 : i32
    return %c0_i32, %c0_i32_0 : i32, i32
  }
  func.func @transform_4(%arg0: i32, %arg1: i32) -> (i32, i32) {
    %c0_i32 = arith.constant 0 : i32
    %c0_i32_0 = arith.constant 0 : i32
    %c0_i32_1 = arith.constant 0 : i32
    return %c0_i32, %c0_i32_0 : i32, i32
  }
  func.func @transform_5(%arg0: i32, %arg1: i32) -> (i32, i32) {
    %c0_i32 = arith.constant 0 : i32
    %c0_i32_0 = arith.constant 0 : i32
    %c0_i32_1 = arith.constant 0 : i32
    return %c0_i32, %c0_i32_0 : i32, i32
  }
  func.func @transform_6(%arg0: i32, %arg1: i32) -> (i32, i32) {
    %c0_i32 = arith.constant 0 : i32
    %c0_i32_0 = arith.constant 0 : i32
    %c0_i32_1 = arith.constant 0 : i32
    return %c0_i32, %c0_i32_0 : i32, i32
  }
  func.func @transform_7(%arg0: i32, %arg1: i32) -> (i32, i32) {
    %c0_i32 = arith.constant 0 : i32
    %c0_i32_0 = arith.constant 0 : i32
    %c0_i32_1 = arith.constant 0 : i32
    return %c0_i32, %c0_i32_0 : i32, i32
  }
  func.func @transform_8(%arg0: i32, %arg1: i32) -> (i32, i32) {
    %c0_i32 = arith.constant 0 : i32
    %c0_i32_0 = arith.constant 0 : i32
    %c0_i32_1 = arith.constant 0 : i32
    return %c0_i32, %c0_i32_0 : i32, i32
  }
  func.func @transform_9(%arg0: i32, %arg1: i32) -> (i32, i32) {
    %c0_i32 = arith.constant 0 : i32
    %c0_i32_0 = arith.constant 0 : i32
    %c0_i32_1 = arith.constant 0 : i32
    return %c0_i32, %c0_i32_0 : i32, i32
  }
  func.func @transform_10(%arg0: i32, %arg1: i32) -> (i32, i32) {
    %c0_i32 = arith.constant 0 : i32
    %c0_i32_0 = arith.constant 0 : i32
    %c0_i32_1 = arith.constant 0 : i32
    return %c0_i32, %c0_i32_0 : i32, i32
  }
  func.func @transform_11(%arg0: i32, %arg1: i32) -> (i32, i32, i32) {
    %c0_i32 = arith.constant 0 : i32
    %c0_i32_0 = arith.constant 0 : i32
    return %arg0, %arg1, %c0_i32 : i32, i32, i32
  }
}

</mosaic_0001>

<bundles_post_ra>
// kernel: tpu_custom_call.1
= control target key start
LH: loop header
LB: loop body
LE: loop exit
PB: predicated region body
PF: predicated region fallthrough
CT: control target
= control target key end

     0   :  { %s2994_s0 = inlined_call_operand.hbm [shape: f32[2,16,128], index: 0, kind: input, shape index: {}]   ;;  %s2995_s1 = inlined_call_operand.hbm [shape: f32[2,16,128], index: 1, kind: input, shape index: {}]   ;;  %s2996_s2 = inlined_call_operand.vmem [shape: f32[2,1,16], index: 2, kind: input, shape index: {}]   ;;  %s2997_s3 = inlined_call_operand.hbm [shape: bf16[128,128], index: 3, kind: input, shape index: {}]   ;;  %s2998_s4 = inlined_call_operand.vmem [shape: f32[1,128], index: 4, kind: input, shape index: {}]   ;;  %s2999_s5 = inlined_call_operand.hbm [shape: bf16[128,128], index: 5, kind: input, shape index: {}]   ;;  %s3000_s6 = inlined_call_operand.vmem [shape: f32[1,128], index: 6, kind: input, shape index: {}]   ;;  %s3001_s7 = inlined_call_operand.hbm [shape: bf16[128,128], index: 7, kind: input, shape index: {}]   ;;  %s3002_s8 = inlined_call_operand.vmem [shape: f32[1,128], index: 8, kind: input, shape index: {}]   ;;  %s3003_s9 = inlined_call_operand.hbm [shape: bf16[128,128], index: 9, kind: input, shape index: {}]   ;;  %s3004_s10 = inlined_call_operand.vmem [shape: f32[1,128], index: 10, kind: input, shape index: {}]   ;;  %s3005_s11 = inlined_call_operand.hbm [shape: f32[2,16,128], index: 11, kind: output, shape index: {}]  }
   0x1   :  { %3015 = sst [smem:[#allocation26_spill]] %s2994_s0 }
   0x2   :  { %3016 = sst [smem:[#allocation27_spill]] %s2997_s3 }
   0x3   :  { %3017 = sst [smem:[#allocation28_spill]] %s2999_s5 }
   0x4   :  { %3018 = sst [smem:[#allocation29_spill]] %s3001_s7 }
   0x5   :  { %3019 = sst [smem:[#allocation30_spill]] %s3003_s9 }
   0x6   :  { %3020 = sst [smem:[#allocation31_spill]] %s3005_s11 }
   0x7   :  { %16 = vsyncpa [#allocation3], 0 }
   0x8   :  { %18 = vsyncpa [#allocation3 + $0x1], 0 }
   0x9   :  { %19 = vsyncpa [#allocation6], 0 }
   0xa   :  { %21 = vsyncpa [#allocation6 + $0x1], 0 }
   0xb   :  { %22 = vsyncpa [#allocation9], 0 }
   0xc   :  { %23 = vsyncpa [#allocation12], 0 }
   0xd   :  { %24 = vsyncpa [#allocation4], 0 }
   0xe   :  { %26 = vsyncpa [#allocation4 + $0x1], 0  ;;  %s2592_s17 = smov 0   ;;  %s2594_s18 = smov 0  }
   0xf   :  { %s2596_s19 = smov 0   ;;  %s2598_s20 = smov 0  }
  0x10   :  { %s2600_s21 = smov 0   ;;  %s2602_s22 = smov 0  }
  0x11 LB: > { %3021 = sst [smem:[#allocation20_spill]] %s2491_s17  ;;  %s2623_s23 = sadd.s32 4294967295, %s2511_s22   ;;  %s2511_s22 = sphi %s2602_s22, %s32_s22   ;;  %s2507_s21 = sphi %s2600_s21, %s3057_s21   ;;  %s2503_s20 = sphi %s2598_s20, %s3056_s20   ;;  %s2499_s19 = sphi %s2596_s19, %s3052_s19   ;;  %s2495_s18 = sphi %s2594_s18, %s3055_s18   ;;  %s2491_s17 = sphi %s2592_s17, %s3054_s17  }
  0x12   : > { %3022 = sst [smem:[#allocation21_spill]] %s2499_s19  ;;  %s1758_s24 = sadd.s32 4294967294, %s2511_s22  }
  0x13   : > { %p66_p0 = scmp.ne.s32.totalorder %s2495_s18, %s2491_s17  ;;  %p3008_p1 = scmp.eq.s32.totalorder %s2623_s23, 0 }
  0x14   : > { %p312_p2 = scmp.eq.s32.totalorder %s2623_s23, 1  ;;  %p318_p3 = scmp.eq.s32.totalorder %s1758_s24, 1 }
  0x15   : > { %p2632_p4 = por %p3008_p1, %p66_p0  ;;  %p1759_p5 = scmp.ge.s32.totalorder %s2511_s22, 1 }
  0x16   : > { %p2637_p6 = por %p318_p3, %p66_p0  ;;  %p325_p7 = scmp.lt.s32.totalorder %s2511_s22, 3 }
  0x17   : > { %s2513_s28 = smov [#allocation7]   ;;  %s2514_s12 = smov [#allocation8]  }
  0x18   : > { %s3024_s26 = scalar_select %p2637_p6, 1, 0 }
  0x19   : > { %p2642_p8 = pnand %p1759_p5, %p325_p7  ;;  %s337_s29 = sshll.u32 %s2513_s28, 4  ;;  %s338_s29 = int_to_ptr.vmem [resolvable:$true] %s337_s29 }
  0x1a   : > { %3025 = sst [smem:[#allocation22_spill]] %s3024_s26  ;;  %s353_s13 = sshll.u32 %s2514_s12, 4  ;;  %s354_s13 = int_to_ptr.vmem [resolvable:$true] %s353_s13 }
  0x1b   : > { %p2033_p9 = pneg %p2642_p8  ;;  %s2515_s14 = smov [#allocation10]  }
  0x1c   : > { %s369_s15 = sshll.u32 %s2515_s14, 4  ;;  %s2266_s16 = scalar_lea.vmem %s338_s29, 1024  ;;  %s370_s15 = int_to_ptr.vmem [resolvable:$true] %s369_s15 }
  0x1d   : > { %p2651_p11 = pnand %p2033_p9, %p3008_p1  ;;  %p2267_p13 = scmp.ne.s32.totalorder %s338_s29, %s2266_s16 }
  0x1e   : > { %p2274_p5 = scmp.lt.s32.totalorder %s338_s29, %s338_s29  ;;  %p2275_p7 = scmp.lt.s32.totalorder %s2266_s16, %s2266_s16 }
  0x1f   : > { %p2257_p12 = pneg %p2651_p11 }
  0x20   : > { %p2276_p9 = por %p2275_p7, %p2274_p5 }
  0x21   : > { %p2269_p0 = pnand %p2267_p13, %p2257_p12 }
  0x23   : > { %p2270_p3 = pneg %p2269_p0 }
  0x25   : > { %p2277_p10 = pnand %p2276_p9, %p2270_p3 }
  0x27   : > { %2280 = shalt.err (!%p2277_p10)
}
  0x28   : > { %s2516_s24 = smov 64   ;;  %s2517_s28 = smov 4  }
  0x29   : > { %s3028_s3 = sld [smem:[#allocation27_spill]]  ;;  %s2292_s26 = scalar_lea.vmem %s354_s13, 1024 }
  0x2a   : > { %p2293_p13 = scmp.ne.s32.totalorder %s354_s13, %s2292_s26  ;;  %p2300_p3 = scmp.lt.s32.totalorder %s354_s13, %s354_s13 }
  0x2b   : > { %p2301_p10 = scmp.lt.s32.totalorder %s2292_s26, %s2292_s26 }
  0x2c   : > { %p2295_p0 = pnand %p2293_p13, %p2257_p12 }
  0x2d   : > { %p2302_p7 = por %p2301_p10, %p2300_p3 }
  0x2e   : > { %p2296_p5 = pneg %p2295_p0 }
  0x2f   : > { %2036 = dma.hbm_to_vmem [thread:$0]  (!%p2651_p11), %s3028_s3, 1024, %s338_s29, [#allocation6], %s2516_s24, %s2516_s24, %s2517_s28  }
  0x30   : > { %p2303_p9 = pnand %p2302_p7, %p2296_p5 }
  0x32   : > { %2306 = shalt.err (!%p2303_p9)
}
  0x33   : > { %s3029_s5 = sld [smem:[#allocation28_spill]]  ;;  %s2318_s29 = scalar_lea.vmem %s370_s15, 1024 }
  0x34   : > { %p2319_p1 = scmp.ne.s32.totalorder %s370_s15, %s2318_s29  ;;  %p2326_p3 = scmp.lt.s32.totalorder %s370_s15, %s370_s15 }
  0x35   : > { %p2327_p5 = scmp.lt.s32.totalorder %s2318_s29, %s2318_s29 }
  0x36   : > { %p2321_p13 = pnand %p2319_p1, %p2257_p12 }
  0x37   : > { %p2328_p10 = por %p2327_p5, %p2326_p3 }
  0x38   : > { %p2322_p0 = pneg %p2321_p13 }
  0x39   : > { %2039 = dma.hbm_to_vmem [thread:$0]  (!%p2651_p11), %s3029_s5, 1024, %s354_s13, [#allocation9], %s2516_s24, %s2516_s24, %s2517_s28  }
  0x3a   : > { %p2329_p7 = pnand %p2328_p10, %p2322_p0 }
  0x3c   : > { %2332 = shalt.err (!%p2329_p7)
}
  0x3d   : > { %s3030_s7 = sld [smem:[#allocation29_spill]]  ;;  %s2518_s13 = smov [#allocation11]  }
  0x3e   : > { %s385_s12 = sshll.u32 %s2518_s13, 4  ;;  %s386_s12 = int_to_ptr.vmem [resolvable:$true] %s385_s12 }
  0x3f   : > { %s2344_s14 = scalar_lea.vmem %s386_s12, 1024  ;;  %p2352_p0 = scmp.lt.s32.totalorder %s386_s12, %s386_s12 }
  0x40   : > { %p2345_p1 = scmp.ne.s32.totalorder %s386_s12, %s2344_s14  ;;  %p2353_p3 = scmp.lt.s32.totalorder %s2344_s14, %s2344_s14 }
  0x42   : > { %p2347_p9 = pnand %p2345_p1, %p2257_p12  ;;  %p2354_p5 = por %p2353_p3, %p2352_p0 }
  0x43   : > { %2042 = dma.hbm_to_vmem [thread:$0]  (!%p2651_p11), %s3030_s7, 1024, %s370_s15, [#allocation9], %s2516_s24, %s2516_s24, %s2517_s28  }
  0x44   : > { %p2348_p13 = pneg %p2347_p9 }
  0x46   : > { %p2355_p10 = pnand %p2354_p5, %p2348_p13 }
  0x48   : > { %2358 = shalt.err (!%p2355_p10)
}
  0x49   : > { %s3031_s9 = sld [smem:[#allocation30_spill]]  ;;  %s44_s30 = sadd.s32 1, %s2507_s21 }
  0x4a   : > { %s53_s29 = sadd.s32 1, %s2499_s19  ;;  %p46_p12 = scmp.ge.s32.totalorder %s44_s30, 2 }
  0x4b   : > { %p60_p7 = scmp.ne.s32.totalorder %s2499_s19, %s2495_s18  ;;  %p61_p1 = scmp.eq.s32.totalorder %s2511_s22, 0 }
  0x4c   : > { %p2061_p9 = scmp.lt.s32.totalorder %s2511_s22, 2  ;;  %s3059_s30 = smov (%p46_p12, %s44_s30), 0 }
  0x4d   : > { %3032 = sst [smem:[#allocation23_spill]] %s3059_s30  ;;  %p62_p13 = por %p61_p1, %p60_p7 }
  0x4e   : > { %p2711_p0 = por %p312_p2, %p60_p7  ;;  %s48_s26 = ssub.s32 %s2507_s21, %s3059_s30 }
  0x4f   : > { %2045 = dma.hbm_to_vmem [thread:$0]  (!%p2651_p11), %s3031_s9, 1024, %s386_s12, [#allocation12], %s2516_s24, %s2516_s24, %s2517_s28  }
  0x50   : > { %s3033_s17 = scalar_select %p2711_p0, 1, 0 }
  0x51   : > { %s402_s13 = sand.u32 1, %s2499_s19   ;;  %p51_p11 = scmp.eq.s32.totalorder %s48_s26, 0 }
  0x52   : > { %3034 = sst [smem:[#allocation24_spill]] %s3033_s17  ;;  %s2718_s24 = sshll.u32 %s402_s13, 4 }
  0x53   : > { %s3009_s28 = sshll.u32 %s2507_s21, 8  ;;  %s3036_s0 = sld [smem:[#allocation26_spill]] }
  0x54   : > { %s2722_s12 = scalar_select %p51_p11, %s2499_s19, %s53_s29  }
  0x55   : > { %s406_s3 = scalar_lea.vmem [#allocation2], %s2718_s24  ;;  %p2732_p2 = pnand %p2061_p9, %p62_p13 }
  0x56   : > { %3035 = sst [smem:[#allocation25_spill]] %s2722_s12  ;;  %s415_s5 = sshll.u32 %s406_s3, 4  ;;  %s416_s5 = int_to_ptr.vmem [resolvable:$true] %s415_s5 }
  0x57   : > { %s403_s26 = scalar_lea.sflag [#allocation3], %s402_s13  ;;  %p2361_p3 = pneg %p2732_p2 }
  0x58   : > { %s2372_s29 = scalar_lea.vmem %s416_s5, 256  ;;  %s2519_s14 = smov [#allocation2]  }
  0x59   : > { %s414_s16 = scalar_lea.hbm %s3036_s0, %s3009_s28  ;;  %p2373_p5 = scmp.ne.s32.totalorder %s416_s5, %s2372_s29 }
  0x5a   : > { %s2377_s15 = sshll.u32 %s2519_s14, 4  ;;  %s2378_s15 = int_to_ptr.vmem [resolvable:$false] %s2377_s15 }
  0x5b   : > { %p2375_p10 = pnand %p2373_p5, %p2361_p3  ;;  %s2379_s3 = scalar_lea.vmem %s2378_s15, 512 }
  0x5c   : > { %p2380_p7 = scmp.lt.s32.totalorder %s416_s5, %s2378_s15  ;;  %p2381_p1 = scmp.lt.s32.totalorder %s2379_s3, %s2372_s29 }
  0x5d   : > { %p2376_p12 = pneg %p2375_p10 }
  0x5e   : > { %p2382_p9 = por %p2381_p1, %p2380_p7 }
  0x60   : > { %p2383_p13 = pnand %p2382_p9, %p2376_p12 }
  0x62   : > { %2386 = shalt.err (!%p2383_p13)
}
  0x63   : > { %s2520_s28 = smov 128   ;;  %s2521_s13 = smov 8  }
  0x64   : > { %2049 = dma.hbm_to_vmem [thread:$0]  (!%p2732_p2), %s414_s16, 256, %s416_s5, %s403_s26, %s2520_s28, %s2520_s28, %s2521_s13  }
  0x65   : > { %s3038_s0 = sshll.u32 %s2507_s21, 8  ;;  %s429_s12 = scalar_lea.vmem [#allocation5], %s2718_s24 }
  0x66   : > { %s435_s14 = scalar_lea.hbm %s2995_s1, %s3038_s0  ;;  %s436_s15 = sshll.u32 %s429_s12, 4  ;;  %s437_s15 = int_to_ptr.vmem [resolvable:$true] %s436_s15 }
  0x67   : > { %s425_s29 = sand.u32 1, %s2511_s22   ;;  %s2400_s19 = scalar_lea.vmem %s437_s15, 256 }
  0x68   : > { %s426_s3 = scalar_lea.sflag [#allocation6], %s425_s29  ;;  %p2401_p11 = scmp.ne.s32.totalorder %s437_s15, %s2400_s19 }
  0x69   : > { %s2522_s11 = smov [#allocation5]  }
  0x6a   : > { %p2403_p5 = pnand %p2401_p11, %p2361_p3  ;;  %s2405_s17 = sshll.u32 %s2522_s11, 4  ;;  %s2406_s17 = int_to_ptr.vmem [resolvable:$false] %s2405_s17 }
  0x6b   : > { %s2407_s5 = scalar_lea.vmem %s2406_s17, 512  ;;  %p2408_p12 = scmp.lt.s32.totalorder %s437_s15, %s2406_s17 }
  0x6c   : > { %p2404_p10 = pneg %p2403_p5  ;;  %p2409_p7 = scmp.lt.s32.totalorder %s2407_s5, %s2400_s19 }
  0x6e   : > { %p2410_p1 = por %p2409_p7, %p2408_p12 }
  0x70   : > { %p2411_p9 = pnand %p2410_p1, %p2404_p10 }
  0x72   : > { %2414 = shalt.err (!%p2411_p9)
}
  0x73   : > { %2052 = dma.hbm_to_vmem [thread:$0]  (!%p2732_p2), %s435_s14, 256, %s437_s15, %s426_s3, %s2520_s28, %s2520_s28, %s2521_s13  }
  0x74   : > { %454 = sbr.rel (%p2642_p8) target bundleno = 1563 (0x61b), region = 64  ;;  %s2758_s0 = sand.u32 (!%p2642_p8), 1, %s2495_s18  }
  0x75   : > { %s2761_s9 = sshll.u32 (!%p2642_p8), %s2758_s0, 4  ;;  %s457_s11 = scalar_lea.sflag (!%p2642_p8), [#allocation3], %s2758_s0 }
  0x76   : > { %s460_s19 = scalar_lea.vmem (!%p2642_p8), [#allocation2], %s2761_s9 }
  0x79   : > { %2466 = dma.done.wait (%p2632_p4), %s457_s11, 256  }
  0x7a   : > { %2468 = vsyncadd (%p2632_p4), %s457_s11, 4294967040  ;;  %s465_s7 = sand.u32 1, %s2623_s23   ;;  %s469_s30 = scalar_lea.vmem [#allocation5], %s2761_s9 }
  0x7b   : > { %s466_s27 = scalar_lea.sflag [#allocation6], %s465_s7 }
  0x7c   : > { %2470 = dma.done.wait (%p2632_p4), %s466_s27, 256  }
  0x7d   : > { %2472 = vsyncadd (%p2632_p4), %s466_s27, 4294967040  ;;  %p3039_p8 = scmp.eq.s32.totalorder %s2623_s23, 0 }
  0x7f   : > { %2474 = dma.done.wait (%p3039_p8), [#allocation6], 1024   ;;  %p3040_p2 = pmov %p3039_p8 }
  0x81   : > { %2476 = vsyncadd (%p3040_p2), [#allocation6], 4294966272  ;;  %p3041_p3 = pmov %p3040_p2 }
  0x82   : > { %p3042_p13 = pmov %p3040_p2 }
  0x83   : > { %2478 = dma.done.wait (%p3041_p3), [#allocation9], 2048  }
  0x84   : > { %2480 = vsyncadd (%p3042_p13), [#allocation9], 4294965248  ;;  %p3043_p11 = pmov %p3040_p2 }
  0x85   : > { %p3044_p5 = pmov %p3040_p2 }
  0x86   : > { %2482 = dma.done.wait (%p3043_p11), [#allocation12], 1024  }
  0x87   : > { %2484 = vsyncadd (%p3044_p5), [#allocation12], 4294966272  ;;  %v2523_v0 = vmov 0.0   ;;  %vm2524_vm0 = vmmov 0   ;;  %v2191_v1 = vld [vmem:[#allocation8 + $0x38] sm:$0xff]   ;;  %v2193_v3 = vld [vmem:[#allocation8 + $0x30] sm:$0xff]  }
  0x88   : > { %1903 = vmatprep.subr.bf16.mxu1 %v2523_v0  ;;  %1883 = vmatprep.subr.bf16.mxu0 %v2523_v0  ;;  %v2192_v2 = vld [vmem:[#allocation7 + $0x38] sm:$0xff]   ;;  %v2194_v4 = vld [vmem:[#allocation7 + $0x30] sm:$0xff]   ;;  %v2195_v5 = vld [vmem:[#allocation8 + $0x28] sm:$0xff]   ;;  %vm952_vm1 = vcmask 261120   ;;  %s2525_s28 = smov 64   ;;  %s2526_s12 = smov 96  }
  0x89   : > { %1919 = vmatprep.mubr.msk.bf16.mxu1 %vm2524_vm0, %v2523_v0  ;;  %1899 = vmatprep.mubr.msk.bf16.mxu0 %vm2524_vm0, %v2523_v0  ;;  %v2196_v6 = vld [vmem:[#allocation7 + $0x28] sm:$0xff]   ;;  %v2197_v7 = vld [vmem:[#allocation8 + $0x20] sm:$0xff]   ;;  %v2199_v9 = vld [vmem:[#allocation8 + $0x18] sm:$0xff]   ;;  %s2527_s16 = smov 32   ;;  %p533_p4 = scmp.lt.s32.totalorder %s2503_s20, 1  ;;  %vm1166_vm3 = vcmask 130048  }
  0x8a   : > { %1904 = vmatpush3.bf16.msra.mxu1 %v2191_v1  ;;  %1884 = vmatpush3.bf16.msra.mxu0 %v2192_v2  ;;  %v2198_v8 = vld [vmem:[#allocation7 + $0x20] sm:$0xff]   ;;  %v2200_v10 = vld [vmem:[#allocation7 + $0x18] sm:$0xff]   ;;  %v2201_v11 = vld [vmem:[#allocation8 + $0x10] sm:$0xff]   ;;  %vm1461_vm4 = vcmask 523264   ;;  %vm1464_vm5 = vcmask 785408   ;;  %s3046_s17 = sld [smem:[#allocation31_spill]] }
  0x8b   : > { %1905 = vmatprep.subr.bf16.mxu1 %v2523_v0  ;;  %1885 = vmatprep.subr.bf16.mxu0 %v2523_v0  ;;  %v2202_v12 = vld [vmem:[#allocation7 + $0x10] sm:$0xff]   ;;  %v2203_v13 = vld [vmem:[#allocation8 + $0x8] sm:$0xff]   ;;  %v2205_v15 = vld [vmem:[#allocation8] sm:$0xff]   ;;  %s534_s26 = scalar_select %p533_p4, %s2503_s20, 1 }
  0x8c   : > { %v2204_v14 = vld [vmem:[#allocation7 + $0x8] sm:$0xff]   ;;  %v540_v16 = vld [vmem:[%s469_s30] sm:$0xff]  ;;  %v2207_v42 = vld [vmem:[#allocation10 + $0x38] sm:$0xff]  }
  0x8d   : > { %v541_v17 = vld [vmem:[%s469_s30 + $0x8] sm:$0xff]  ;;  %v2206_v18 = vld [vmem:[#allocation7] sm:$0xff]   ;;  %v2208_v43 = vld [vmem:[#allocation10 + $0x30] sm:$0xff]   ;;  %s535_s15 = scalar_lea.vmem %s2996_s2, %s534_s26  ;;  %s1830_s30 = sshll.u32 %s2503_s20, 8 }
  0x8e   : > { %1906 = vmatpush3.bf16.msra.mxu1 %v2193_v3  ;;  %1886 = vmatpush3.bf16.msra.mxu0 %v2194_v4  ;;  %v2811_v19 = vld [vmem:[%s460_s19] sm:$0xff]  ;;  %v2815_v20 = vld [vmem:[%s460_s19 + $0x8] sm:$0xff]  ;;  %v2819_v21 = vpack.c.bf16 %v541_v17, %v540_v16  ;;  %s531_s19 = scalar_lea.vmem [#allocation13], %s2761_s9  ;;  %s1585_s9 = scalar_lea.sflag [#allocation4], %s2758_s0 }
  0x8f   : > { %1907 = vmatprep.subr.bf16.mxu1 %v2523_v0  ;;  %1887 = vmatprep.subr.bf16.mxu0 %v2523_v0  ;;  %v542_v22 = vpack.c.bf16 %v2815_v20, %v2811_v19  ;;  %v1788_v25 = vld [vmem:[%s3000_s6] ss:$0 sm:$0xff]  ;;  %v2209_v44 = vld [vmem:[#allocation10 + $0x28] sm:$0xff]   ;;  %v2211_v46 = vld [vmem:[#allocation10 + $0x18] sm:$0xff]   ;;  %s1600_s27 = sshll.u32 %s531_s19, 4  ;;  %s2529_s20 = smov [#allocation13]   ;;  %s2940_s27 = int_to_ptr.vmem [resolvable:$true] %s1600_s27 }
  0x90   : > { %v1779_v26 = vld [vmem:[%s2998_s4] ss:$0 sm:$0xff]  ;;  %v2212_v47 = vld [vmem:[#allocation10 + $0x10] sm:$0xff]   ;;  %v2213_v48 = vld [vmem:[#allocation10 + $0x8] sm:$0xff]   ;;  %s3047_s24 = smov %s3046_s17 }
  0x91   : > { %v2210_v45 = vld [vmem:[#allocation10 + $0x20] sm:$0xff]  }
  0x92   : > { %1908 = vmatpush3.bf16.msra.mxu1 %v2195_v5  ;;  %1888 = vmatpush3.bf16.msra.mxu0 %v2196_v6  ;;  %v2214_v49 = vld [vmem:[#allocation10] sm:$0xff]  }
  0x93   : > { %1909 = vmatprep.subr.bf16.mxu1 %v2523_v0  ;;  %1889 = vmatprep.subr.bf16.mxu0 %v2523_v0 }
  0x96   : > { %1910 = vmatpush3.bf16.msra.mxu1 %v2197_v7  ;;  %1890 = vmatpush3.bf16.msra.mxu0 %v2198_v8 }
  0x97   : > { %1911 = vmatprep.subr.bf16.mxu1 %v2523_v0  ;;  %1891 = vmatprep.subr.bf16.mxu0 %v2523_v0 }
  0x9a   : > { %1912 = vmatpush3.bf16.msra.mxu1 %v2199_v9  ;;  %1892 = vmatpush3.bf16.msra.mxu0 %v2200_v10 }
  0x9b   : > { %1913 = vmatprep.subr.bf16.mxu1 %v2523_v0  ;;  %1893 = vmatprep.subr.bf16.mxu0 %v2523_v0 }
  0x9e   : > { %1914 = vmatpush3.bf16.msra.mxu1 %v2201_v11  ;;  %1894 = vmatpush3.bf16.msra.mxu0 %v2202_v12 }
  0x9f   : > { %1915 = vmatprep.subr.bf16.mxu1 %v2523_v0  ;;  %1895 = vmatprep.subr.bf16.mxu0 %v2523_v0 }
  0xa2   : > { %1916 = vmatpush3.bf16.msra.mxu1 %v2203_v13  ;;  %1896 = vmatpush3.bf16.msra.mxu0 %v2204_v14  ;;  %v1153_v14 = vlaneseq }
  0xa3   : > { %1917 = vmatprep.subr.bf16.mxu1 %v2523_v0  ;;  %1897 = vmatprep.subr.bf16.mxu0 %v2523_v0 }
  0xa4   : > { %v1154_v16 = vshrl.u32 %v1153_v14, 7 }
  0xa6   : > { %1918 = vmatpush3.bf16.msra.mxu1 %v2205_v15  ;;  %1898 = vmatpush3.bf16.msra.mxu0 %v2206_v18  ;;  %v1149_v15 = vld [vmem:[%s535_s15] sm:$0x1]  ;;  %v1155_v17 = vsub.s32 0, %v1154_v16  ;;  %v2528_v18 = vmov -1e+30  }
  0xa7   : > { %1943 = vmatprep.subr.bf16.mxu1 %v2523_v0  ;;  %1923 = vmatprep.subr.bf16.mxu0 %v2523_v0  ;;  %vm1150_vm2 = vcmp.gt.f32.partialorder %v1149_v15, 0.0 }
  0xa9   : > { %1920 = vmatmul.mubr.bf16.vlgmr.msra.gmra.mxu1 %v2819_v21  ;;  %1900 = vmatmul.mubr.bf16.vlgmr.msra.gmra.mxu0 %v542_v22 }
  0xaa   : > { %1945 = vmatprep.mubr.msk.bf16.mxu1 %vm2524_vm0, %v2523_v0  ;;  %1939 = vmatprep.mubr.msk.bf16.mxu0 %vm2524_vm0, %v2523_v0 }
  0xab   : > { %1924 = vmatpush3.bf16.msra.mxu0 %v2207_v42 }
  0xac   : > { %1925 = vmatprep.subr.bf16.mxu0 %v2523_v0 }
  0xaf   : > { %1926 = vmatpush3.bf16.msra.mxu0 %v2208_v43 }
  0xb0   : > { %1927 = vmatprep.subr.bf16.mxu0 %v2523_v0 }
  0xb3   : > { %1928 = vmatpush3.bf16.msra.mxu0 %v2209_v44 }
  0xb4   : > { %1929 = vmatprep.subr.bf16.mxu0 %v2523_v0 }
  0xb7   : > { %1930 = vmatpush3.bf16.msra.mxu0 %v2210_v45 }
  0xb8   : > { %1931 = vmatprep.subr.bf16.mxu0 %v2523_v0 }
  0xbb   : > { %1932 = vmatpush3.bf16.msra.mxu0 %v2211_v46 }
  0xbc   : > { %1933 = vmatprep.subr.bf16.mxu0 %v2523_v0 }
  0xbf   : > { %1934 = vmatpush3.bf16.msra.mxu0 %v2212_v47 }
  0xc0   : > { %1935 = vmatprep.subr.bf16.mxu0 %v2523_v0 }
  0xc3   : > { %1936 = vmatpush3.bf16.msra.mxu0 %v2213_v48 }
  0xc4   : > { %1937 = vmatprep.subr.bf16.mxu0 %v2523_v0 }
  0xc7   : > { %1938 = vmatpush3.bf16.msra.mxu0 %v2214_v49 }
  0xc8   : > { %1991 = vmatprep.subr.bf16.mxu0 %v2523_v0 }
  0xca   : > { %1940 = vmatmul.mubr.bf16.vlgmr.msra.gmra.mxu0 %v2819_v21  ;;  %v1151_v21 = vsel %vm1150_vm2, 0.0, %v2528_v18 }
  0xcb   : > { %2007 = vmatprep.mubr.msk.bf16.mxu0 %vm2524_vm0, %v2523_v0  ;;  %v1156_v22 = vrot.slane %v1151_v21, %v1155_v17 }
 0x169   : > { %v761_v23 = vpop.f32.mrf.mxu1  ;;  %v649_v24 = vpop.f32.mrf.mxu0 }
 0x16a   : > { %v762_v30 = vadd.f32 %v1788_v25, %v761_v23  ;;  %v650_v31 = vadd.f32 %v1779_v26, %v649_v24 }
 0x16b   : > { %v1921_v27 = vpop.f32.mrf.mxu1  ;;  %v1901_v28 = vpop.f32.mrf.mxu0 }
 0x16d   : > { %v764_v29 = vpop.f32.mrf.mxu1  ;;  %v652_v33 = vpop.f32.mrf.mxu0 }
 0x16e   : > { %v765_v32 = vadd.f32 %v1788_v25, %v764_v29  ;;  %v653_v34 = vadd.f32 %v1779_v26, %v652_v33  ;;  %v1797_v33 = vld [vmem:[%s3002_s8] ss:$0 sm:$0xff] }
 0x16f   : > { %v1922_v35 = vpop.f32.mrf.mxu1  ;;  %v1902_v36 = vpop.f32.mrf.mxu0 }
 0x170   : > { %v2141_v37 = vpack.i.bf16 %v765_v32, %v762_v30  ;;  %v924_v38 = vpack.c.bf16 %v765_v32, %v762_v30  ;;  %v2146_v40 = vpack.i.bf16 %v653_v34, %v650_v31  ;;  %v900_v41 = vpack.c.bf16 %v653_v34, %v650_v31 }
 0x172   : > { %2142 = vrot.lane.b32.xlu1 %v2141_v37, %s2525_s28  ;;  %2132 = vrot.lane.b32.xlu0 %v2141_v37, %s2526_s12  ;;  %v957_v39 = vsel %vm952_vm1, %v924_v38, 0 }
 0x173   : > { %1944 = vmatpush3.bf16.xpose.msra.mxu1 %v957_v39 }
 0x174   : > { %1949 = vmatprep.subr.bf16.mxu1 %v2523_v0 }
 0x176   : > { %2147 = vrot.lane.b32.xlu1 %v2146_v40, %s2525_s28  ;;  %2137 = vrot.lane.b32.xlu0 %v2146_v40, %s2526_s12 }
 0x17a   : > { %2157 = vrot.lane.b32.xlu1 %v2146_v40, %s2527_s16  ;;  %2152 = vrot.lane.b32.xlu0 %v2141_v37, %s2527_s16 }
 0x17b   : > { %1946 = vmatmul.mubr.msk.bf16.vlgmr.msra.gmra.mxu1 %vm952_vm1, %v900_v41 }
 0x17c   : > { %1951 = vmatprep.mubr.msk.bf16.mxu1 %vm2524_vm0, %v2523_v0 }
 0x18a   : > { %v873_v34 = vpop.f32.mrf.mxu0 }
 0x18b   : > { %v874_v36 = vadd.f32 %v1797_v33, %v873_v34 }
 0x18c   : > { %v1941_v35 = vpop.f32.mrf.mxu0 }
 0x18e   : > { %v876_v37 = vpop.f32.mrf.mxu0 }
 0x18f   : > { %v877_v38 = vadd.f32 %v1797_v33, %v876_v37 }
 0x190   : > { %v1942_v39 = vpop.f32.mrf.mxu0 }
 0x191   : > { %v2883_v40 = vpack.i.bf16 %v877_v38, %v874_v36  ;;  %v948_v41 = vpack.c.bf16 %v877_v38, %v874_v36 }
 0x1e4   : > { %v2133_v50 = vpop.permute.xlu0 %2132  ;;  %v2143_v53 = vpop.permute.xlu1 %2142 }
 0x1e5   : > { %v2135_v51 = vunpack.i.h.bf16 %v2133_v50  ;;  %v2134_v52 = vunpack.i.l.bf16 %v2133_v50  ;;  %v2145_v56 = vunpack.i.h.bf16 %v2143_v53  ;;  %v2144_v57 = vunpack.i.l.bf16 %v2143_v53 }
 0x1e7   : > { %v925_v54 = vpack.c.bf16 %v2135_v51, %v2134_v52  ;;  %v926_v61 = vpack.c.bf16 %v2145_v56, %v2144_v57 }
 0x1e8   : > { %v2138_v55 = vpop.permute.xlu0 %2137  ;;  %v2148_v1 = vpop.permute.xlu1 %2147 }
 0x1e9   : > { %v1004_v58 = vsel %vm952_vm1, %v925_v54, 0  ;;  %v2140_v59 = vunpack.i.h.bf16 %v2138_v55  ;;  %v2139_v60 = vunpack.i.l.bf16 %v2138_v55  ;;  %v1051_v4 = vsel %vm952_vm1, %v926_v61, 0 }
 0x1ea   : > { %1950 = vmatpush3.bf16.xpose.msra.mxu1 %v1004_v58  ;;  %v2150_v5 = vunpack.i.h.bf16 %v2148_v1  ;;  %v2149_v6 = vunpack.i.l.bf16 %v2148_v1 }
 0x1eb   : > { %1955 = vmatprep.subr.bf16.mxu1 %v2523_v0  ;;  %v901_v63 = vpack.c.bf16 %v2140_v59, %v2139_v60 }
 0x1ec   : > { %v2153_v62 = vpop.permute.xlu0 %2152  ;;  %v902_v8 = vpack.c.bf16 %v2150_v5, %v2149_v6  ;;  %v2158_v9 = vpop.permute.xlu1 %2157 }
 0x1ed   : > { %v2155_v2 = vunpack.i.h.bf16 %v2153_v62  ;;  %v2154_v3 = vunpack.i.l.bf16 %v2153_v62  ;;  %v2160_v11 = vunpack.i.h.bf16 %v2158_v9  ;;  %v2159_v12 = vunpack.i.l.bf16 %v2158_v9 }
 0x1ef   : > { %v927_v7 = vpack.c.bf16 %v2155_v2, %v2154_v3  ;;  %v903_v13 = vpack.c.bf16 %v2160_v11, %v2159_v12 }
 0x1f1   : > { %1952 = vmatmul.mubr.msk.bf16.vlgmr.msra.gmra.mxu1 %vm952_vm1, %v901_v63  ;;  %v1098_v10 = vsel %vm952_vm1, %v927_v7, 0 }
 0x1f2   : > { %1956 = vmatpush3.bf16.xpose.msra.mxu1 %v1051_v4  ;;  %1957 = vmatprep.mubr.msk.bf16.mxu1 %vm2524_vm0, %v2523_v0 }
 0x1f3   : > { %1961 = vmatprep.subr.bf16.mxu1 %v2523_v0 }
 0x1f9   : > { %1958 = vmatmul.mubr.msk.bf16.vlgmr.msra.gmra.mxu1 %vm952_vm1, %v902_v8 }
 0x1fa   : > { %1962 = vmatpush3.bf16.xpose.msra.mxu1 %v1098_v10  ;;  %1963 = vmatprep.mubr.msk.bf16.mxu1 %vm2524_vm0, %v2523_v0 }
 0x1fb   : > { %1967 = vmatprep.subr.bf16.mxu1 %v2523_v0 }
 0x201   : > { %1964 = vmatmul.mubr.msk.bf16.vlgmr.msra.gmra.mxu1 %vm952_vm1, %v903_v13 }
 0x202   : > { %1969 = vmatprep.mubr.msk.bf16.mxu1 %vm2524_vm0, %v2523_v0  ;;  %1968 = vmatpush3.bf16.msra.mxu1 %v948_v41 }
 0x203   : > { %1973 = vmatprep.subr.bf16.mxu1 %v2523_v0 }
 0x23b   : > { %v993_v23 = vpop.f32.mrf.mxu1 }
 0x23c   : > { %v1141_v24 = vmul.f32 0.17677669, %v993_v23 }
 0x23d   : > { %v1947_v25 = vpop.f32.mrf.mxu1 }
 0x23e   : > { %v1158_v26 = vadd.f32 %v1156_v22, %v1141_v24 }
 0x23f   : > { %v996_v27 = vpop.f32.mrf.mxu1 }
 0x240   : > { %v1142_v28 = vmul.f32 0.17677669, %v996_v27  ;;  %v1167_v29 = vsel %vm1166_vm3, %v1158_v26, -inf }
 0x241   : > { %1168 = vmax.xlane.f32.xlu0 %v1167_v29  ;;  %v1948_v30 = vpop.f32.mrf.mxu1 }
 0x242   : > { %v1159_v31 = vadd.f32 %v1156_v22, %v1142_v28 }
 0x244   : > { %v1170_v32 = vsel %vm1166_vm3, %v1159_v31, -inf }
 0x245   : > { %1171 = vmax.xlane.f32.xlu1 %v1170_v32 }
 0x2b1   : > { %v1040_v42 = vpop.f32.mrf.mxu1 }
 0x2b2   : > { %v1143_v43 = vmul.f32 0.17677669, %v1040_v42 }
 0x2b3   : > { %v1953_v44 = vpop.f32.mrf.mxu1 }
 0x2b4   : > { %v1160_v45 = vadd.f32 %v1156_v22, %v1143_v43 }
 0x2b5   : > { %v1043_v46 = vpop.f32.mrf.mxu1 }
 0x2b6   : > { %v1144_v47 = vmul.f32 0.17677669, %v1043_v46  ;;  %v1173_v48 = vsel %vm1166_vm3, %v1160_v45, -inf }
 0x2b7   : > { %1174 = vmax.xlane.f32.xlu0 %v1173_v48  ;;  %v1954_v49 = vpop.f32.mrf.mxu1 }
 0x2b8   : > { %v1161_v50 = vadd.f32 %v1156_v22, %v1144_v47 }
 0x2b9   : > { %v1087_v51 = vpop.f32.mrf.mxu1 }
 0x2ba   : > { %v1145_v52 = vmul.f32 0.17677669, %v1087_v51  ;;  %v1176_v53 = vsel %vm1166_vm3, %v1161_v50, -inf }
 0x2bb   : > { %1177 = vmax.xlane.f32.xlu0 %v1176_v53  ;;  %v1959_v54 = vpop.f32.mrf.mxu1 }
 0x2bc   : > { %v1162_v55 = vadd.f32 %v1156_v22, %v1145_v52 }
 0x2bd   : > { %v1090_v56 = vpop.f32.mrf.mxu1 }
 0x2be   : > { %v1146_v57 = vmul.f32 0.17677669, %v1090_v56  ;;  %v1179_v58 = vsel %vm1166_vm3, %v1162_v55, -inf }
 0x2bf   : > { %1180 = vmax.xlane.f32.xlu1 %v1179_v58  ;;  %v1960_v59 = vpop.f32.mrf.mxu1 }
 0x2c0   : > { %v1163_v60 = vadd.f32 %v1156_v22, %v1146_v57 }
 0x2c1   : > { %v1134_v61 = vpop.f32.mrf.mxu1 }
 0x2c2   : > { %v1147_v62 = vmul.f32 0.17677669, %v1134_v61  ;;  %v1182_v63 = vsel %vm1166_vm3, %v1163_v60, -inf }
 0x2c3   : > { %1183 = vmax.xlane.f32.xlu0 %v1182_v63  ;;  %v1965_v1 = vpop.f32.mrf.mxu1 }
 0x2c4   : > { %v1164_v2 = vadd.f32 %v1156_v22, %v1147_v62 }
 0x2c5   : > { %v1137_v3 = vpop.f32.mrf.mxu1 }
 0x2c6   : > { %v1148_v4 = vmul.f32 0.17677669, %v1137_v3  ;;  %v1185_v5 = vsel %vm1166_vm3, %v1164_v2, -inf }
 0x2c7   : > { %1186 = vmax.xlane.f32.xlu1 %v1185_v5  ;;  %v1966_v6 = vpop.f32.mrf.mxu1 }
 0x2c8   : > { %v1165_v7 = vadd.f32 %v1156_v22, %v1148_v4 }
 0x2ca   : > { %v1169_v8 = vpop.xlane.xlu0 %1168  ;;  %v1188_v10 = vsel %vm1166_vm3, %v1165_v7, -inf }
 0x2cb   : > { %v1191_v9 = vsub.f32 %v1158_v26, %v1169_v8  ;;  %1189 = vmax.xlane.f32.xlu0 %v1188_v10 }
 0x2cd   : > { %v1199_v11 = vmul.f32 1.442695, %v1191_v9 }
 0x2ce   : > { %v1172_v12 = vpop.xlane.xlu1 %1171 }
 0x2cf   : > { %2223 = vpow2.f32 %v1199_v11  ;;  %v1192_v13 = vsub.f32 %v1159_v31, %v1172_v12 }
 0x2d1   : > { %v1201_v14 = vmul.f32 1.442695, %v1192_v13 }
 0x2d3   : > { %2225 = vpow2.f32 %v1201_v14 }
 0x2dc   : > { %v2224_v15 = vpop.eup %2223 }
 0x2dd   : > { %v1215_v16 = vsel %vm1166_vm3, %v2224_v15, 0.0 }
 0x2de   : > { %1216 = vadd.xlane.f32.xlu1 %v1215_v16 }
 0x2e0   : > { %v2226_v17 = vpop.eup %2225 }
 0x2e1   : > { %v1218_v18 = vsel %vm1166_vm3, %v2226_v17, 0.0 }
 0x2e2   : > { %1219 = vadd.xlane.f32.xlu0 %v1218_v18 }
 0x2ef   : > { %2162 = vrot.lane.b32.xlu1 %v2883_v40, %s2526_s12 }
 0x340   : > { %v1175_v21 = vpop.xlane.xlu0 %1174 }
 0x341   : > { %v1193_v22 = vsub.f32 %v1160_v45, %v1175_v21 }
 0x343   : > { %v1203_v23 = vmul.f32 1.442695, %v1193_v22 }
 0x344   : > { %v1178_v24 = vpop.xlane.xlu0 %1177 }
 0x345   : > { %2227 = vpow2.f32 %v1203_v23  ;;  %v1194_v25 = vsub.f32 %v1161_v50, %v1178_v24 }
 0x347   : > { %v1205_v26 = vmul.f32 1.442695, %v1194_v25 }
 0x348   : > { %v1181_v27 = vpop.xlane.xlu1 %1180 }
 0x349   : > { %2229 = vpow2.f32 %v1205_v26  ;;  %v1195_v28 = vsub.f32 %v1162_v55, %v1181_v27 }
 0x34b   : > { %v1207_v29 = vmul.f32 1.442695, %v1195_v28 }
 0x34c   : > { %v1184_v30 = vpop.xlane.xlu0 %1183 }
 0x34d   : > { %2231 = vpow2.f32 %v1207_v29  ;;  %v1196_v31 = vsub.f32 %v1163_v60, %v1184_v30 }
 0x34f   : > { %v1209_v32 = vmul.f32 1.442695, %v1196_v31 }
 0x350   : > { %v1187_v33 = vpop.xlane.xlu1 %1186 }
 0x351   : > { %2233 = vpow2.f32 %v1209_v32  ;;  %v1197_v34 = vsub.f32 %v1164_v2, %v1187_v33 }
 0x352   : > { %v2228_v35 = vpop.eup %2227 }
 0x353   : > { %v1211_v36 = vmul.f32 1.442695, %v1197_v34  ;;  %v1221_v37 = vsel %vm1166_vm3, %v2228_v35, 0.0  ;;  %v2215_v34 = vld [vmem:[#allocation11 + $0x38] sm:$0xff]  }
 0x354   : > { %v1190_v38 = vpop.xlane.xlu0 %1189  ;;  %1222 = vadd.xlane.f32.xlu1 %v1221_v37  ;;  %1992 = vmatpush3.bf16.msra.mxu0 %v2215_v34  ;;  %v2218_v37 = vld [vmem:[#allocation11 + $0x20] sm:$0xff]  }
 0x355   : > { %2235 = vpow2.f32 %v1211_v36  ;;  %v1198_v39 = vsub.f32 %v1165_v7, %v1190_v38  ;;  %1993 = vmatprep.subr.bf16.mxu0 %v2523_v0  ;;  %v2217_v36 = vld [vmem:[#allocation11 + $0x28] sm:$0xff]   ;;  %v2219_v38 = vld [vmem:[#allocation11 + $0x18] sm:$0xff]  }
 0x356   : > { %v2230_v41 = vpop.eup %2229 }
 0x357   : > { %v1213_v42 = vmul.f32 1.442695, %v1198_v39  ;;  %v1224_v43 = vsel %vm1166_vm3, %v2230_v41, 0.0 }
 0x358   : > { %1225 = vadd.xlane.f32.xlu0 %v1224_v43 }
 0x359   : > { %2237 = vpow2.f32 %v1213_v42  ;;  %v2220_v42 = vld [vmem:[#allocation11 + $0x10] sm:$0xff]  }
 0x35a   : > { %v2232_v44 = vpop.eup %2231 }
 0x35b   : > { %v1227_v45 = vsel %vm1166_vm3, %v2232_v44, 0.0 }
 0x35c   : > { %1228 = vadd.xlane.f32.xlu1 %v1227_v45  ;;  %v2221_v45 = vld [vmem:[#allocation11 + $0x8] sm:$0xff]  }
 0x35e   : > { %v2234_v46 = vpop.eup %2233 }
 0x35f   : > { %v1230_v47 = vsel %vm1166_vm3, %v2234_v46, 0.0 }
 0x360   : > { %1231 = vadd.xlane.f32.xlu0 %v1230_v47 }
 0x362   : > { %v2900_v48 = vpop.eup %2235 }
 0x363   : > { %v1233_v49 = vsel %vm1166_vm3, %v2900_v48, 0.0 }
 0x364   : > { %1234 = vadd.xlane.f32.xlu1 %v1233_v49  ;;  %v2222_v49 = vld [vmem:[#allocation11] sm:$0xff]  }
 0x366   : > { %v2238_v50 = vpop.eup %2237 }
 0x367   : > { %v1217_v51 = vpop.xlane.xlu1 %1216  ;;  %v1236_v52 = vsel %vm1166_vm3, %v2238_v50, 0.0 }
 0x368   : > { %1237 = vadd.xlane.f32.xlu0 %v1236_v52  ;;  %2239 = vrcp.f32 %v1217_v51 }
 0x36b   : > { %v1220_v53 = vpop.xlane.xlu0 %1219  ;;  %v2163_v54 = vpop.permute.xlu1 %2162 }
 0x36c   : > { %2241 = vrcp.f32 %v1220_v53  ;;  %v2165_v56 = vunpack.i.h.bf16 %v2163_v54  ;;  %v2164_v57 = vunpack.i.l.bf16 %v2163_v54 }
 0x36e   : > { %v949_v61 = vpack.c.bf16 %v2165_v56, %v2164_v57 }
 0x375   : > { %2172 = vrot.lane.b32.xlu1 %v2883_v40, %s2527_s16  ;;  %v2240_v55 = vpop.eup %2239 }
 0x376   : > { %v1247_v59 = vmul.f32 %v2240_v55, %v2224_v15 }
 0x379   : > { %v2242_v58 = vpop.eup %2241 }
 0x37a   : > { %v1248_v60 = vmul.f32 %v2242_v58, %v2226_v17 }
 0x37c   : > { %v1255_v62 = vpack.c.bf16 %v1248_v60, %v1247_v59 }
 0x37e   : > { %1970 = vmatmul.mubr.msk.bf16.vlgmr.msra.gmra.mxu1 %vm1166_vm3, %v1255_v62  ;;  %2167 = vrot.lane.b32.xlu0 %v2883_v40, %s2525_s28 }
 0x37f   : > { %1974 = vmatpush3.bf16.msra.mxu1 %v949_v61  ;;  %1975 = vmatprep.mubr.msk.bf16.mxu1 %vm2524_vm0, %v2523_v0 }
 0x380   : > { %1979 = vmatprep.subr.bf16.mxu1 %v2523_v0 }
 0x3dd   : > { %v1223_v63 = vpop.xlane.xlu1 %1222 }
 0x3de   : > { %2243 = vrcp.f32 %v1223_v63 }
 0x3e1   : > { %v1226_v1 = vpop.xlane.xlu0 %1225 }
 0x3e2   : > { %2245 = vrcp.f32 %v1226_v1 }
 0x3e5   : > { %v1229_v2 = vpop.xlane.xlu1 %1228 }
 0x3e6   : > { %2247 = vrcp.f32 %v1229_v2 }
 0x3e9   : > { %v1232_v3 = vpop.xlane.xlu0 %1231 }
 0x3ea   : > { %2249 = vrcp.f32 %v1232_v3 }
 0x3eb   : > { %v2244_v4 = vpop.eup %2243 }
 0x3ec   : > { %v1249_v7 = vmul.f32 %v2244_v4, %v2228_v35  ;;  %v2216_v35 = vld [vmem:[#allocation11 + $0x30] sm:$0xff]  }
 0x3ed   : > { %v1235_v5 = vpop.xlane.xlu1 %1234  ;;  %1994 = vmatpush3.bf16.msra.mxu0 %v2216_v35 }
 0x3ee   : > { %2251 = vrcp.f32 %v1235_v5  ;;  %1995 = vmatprep.subr.bf16.mxu0 %v2523_v0 }
 0x3ef   : > { %v2246_v6 = vpop.eup %2245 }
 0x3f0   : > { %v1250_v40 = vmul.f32 %v2246_v6, %v2230_v41 }
 0x3f1   : > { %v1238_v8 = vpop.xlane.xlu0 %1237  ;;  %v2173_v10 = vpop.permute.xlu1 %2172  ;;  %1996 = vmatpush3.bf16.msra.mxu0 %v2217_v36 }
 0x3f2   : > { %2253 = vrcp.f32 %v1238_v8  ;;  %v1256_v9 = vpack.c.bf16 %v1250_v40, %v1249_v7  ;;  %v2175_v16 = vunpack.i.h.bf16 %v2173_v10  ;;  %v2174_v17 = vunpack.i.l.bf16 %v2173_v10  ;;  %1997 = vmatprep.subr.bf16.mxu0 %v2523_v0 }
 0x3f3   : > { %v2248_v11 = vpop.eup %2247 }
 0x3f4   : > { %1976 = vmatmul.mubr.msk.bf16.vlgmr.msra.gmra.mxu1 %vm1166_vm3, %v1256_v9  ;;  %v1251_v21 = vmul.f32 %v2248_v11, %v2232_v44  ;;  %v951_v24 = vpack.c.bf16 %v2175_v16, %v2174_v17  ;;  %v1814_v9 = vld [vmem:[%s3004_s10] ss:$0 sm:$0xff] }
 0x3f5   : > { %v2168_v12 = vpop.permute.xlu0 %2167  ;;  %1981 = vmatprep.mubr.msk.bf16.mxu1 %vm2524_vm0, %v2523_v0  ;;  %1998 = vmatpush3.bf16.msra.mxu0 %v2218_v37 }
 0x3f6   : > { %v2170_v13 = vunpack.i.h.bf16 %v2168_v12  ;;  %v2169_v14 = vunpack.i.l.bf16 %v2168_v12  ;;  %1999 = vmatprep.subr.bf16.mxu0 %v2523_v0 }
 0x3f7   : > { %v2250_v15 = vpop.eup %2249 }
 0x3f8   : > { %v950_v18 = vpack.c.bf16 %v2170_v13, %v2169_v14  ;;  %v1252_v22 = vmul.f32 %v2250_v15, %v2234_v46 }
 0x3f9   : > { %2000 = vmatpush3.bf16.msra.mxu0 %v2219_v38 }
 0x3fa   : > { %1980 = vmatpush3.bf16.msra.mxu1 %v950_v18  ;;  %v1257_v23 = vpack.c.bf16 %v1252_v22, %v1251_v21  ;;  %2001 = vmatprep.subr.bf16.mxu0 %v2523_v0 }
 0x3fb   : > { %1985 = vmatprep.subr.bf16.mxu1 %v2523_v0  ;;  %v2252_v25 = vpop.eup %2251 }
 0x3fc   : > { %v1253_v27 = vmul.f32 %v2252_v25, %v2900_v48 }
 0x3fd   : > { %1982 = vmatmul.mubr.msk.bf16.vlgmr.msra.gmra.mxu1 %vm1166_vm3, %v1257_v23  ;;  %2002 = vmatpush3.bf16.msra.mxu0 %v2220_v42 }
 0x3fe   : > { %1986 = vmatpush3.bf16.msra.mxu1 %v951_v24  ;;  %1987 = vmatprep.mubr.msk.bf16.mxu1 %vm2524_vm0, %v2523_v0 }
 0x3ff   : > { %v2254_v26 = vpop.eup %2253  ;;  %2003 = vmatprep.subr.bf16.mxu0 %v2523_v0 }
 0x400   : > { %v1254_v28 = vmul.f32 %v2254_v26, %v2238_v50 }
 0x401   : > { %2004 = vmatpush3.bf16.msra.mxu0 %v2221_v45 }
 0x402   : > { %v1258_v29 = vpack.c.bf16 %v1254_v28, %v1253_v27  ;;  %2005 = vmatprep.subr.bf16.mxu0 %v2523_v0 }
 0x405   : > { %1988 = vmatmul.mubr.msk.bf16.vlgmr.msra.gmra.mxu1 %vm1166_vm3, %v1258_v29  ;;  %2006 = vmatpush3.bf16.msra.mxu0 %v2222_v49 }
 0x43e   : > { %v1296_v30 = vpop.f32.mrf.mxu1 }
 0x440   : > { %v1971_v31 = vpop.f32.mrf.mxu1 }
 0x442   : > { %v1299_v32 = vpop.f32.mrf.mxu1 }
 0x444   : > { %v1972_v33 = vpop.f32.mrf.mxu1 }
 0x4b4   : > { %v1340_v39 = vpop.f32.mrf.mxu1 }
 0x4b6   : > { %v1977_v41 = vpop.f32.mrf.mxu1 }
 0x4b8   : > { %v1343_v43 = vpop.f32.mrf.mxu1 }
 0x4b9   : > { %v2176_v44 = vpack.i.bf16 %v1343_v43, %v1340_v39 }
 0x4ba   : > { %v1978_v46 = vpop.f32.mrf.mxu1 }
 0x4bb   : > { %2177 = vrot.lane.b32.xlu1 %v2176_v44, %s2527_s16  ;;  %s2419_s16 = sshll.u32 %s2529_s20, 4  ;;  %s2420_s16 = int_to_ptr.vmem [resolvable:$false] %s2419_s16 }
 0x4bc   : > { %s2421_s26 = scalar_lea.vmem %s2420_s16, 512  ;;  %p2422_p1 = scmp.lt.s32.totalorder %s2940_s27, %s2420_s16 }
 0x4bd   : > { %v1384_v47 = vpop.f32.mrf.mxu1 }
 0x4bf   : > { %v1983_v48 = vpop.f32.mrf.mxu1 }
 0x4c1   : > { %v1387_v50 = vpop.f32.mrf.mxu1 }
 0x4c2   : > { %v2181_v51 = vpack.i.bf16 %v1387_v50, %v1384_v47 }
 0x4c3   : > { %v1984_v52 = vpop.f32.mrf.mxu1 }
 0x4c4   : > { %2182 = vrot.lane.b32.xlu0 %v2181_v51, %s2525_s28  ;;  %s2945_s28 = scalar_lea.hbm %s3046_s17, %s1830_s30 }
 0x4c5   : > { %v1428_v53 = vpop.f32.mrf.mxu1 }
 0x4c7   : > { %v1989_v54 = vpop.f32.mrf.mxu1 }
 0x4c9   : > { %v1431_v55 = vpop.f32.mrf.mxu1 }
 0x4ca   : > { %v2186_v56 = vpack.i.bf16 %v1431_v55, %v1428_v53 }
 0x4cb   : > { %v1990_v57 = vpop.f32.mrf.mxu1 }
 0x4cc   : > { %2187 = vrot.lane.b32.xlu1 %v2186_v56, %s2526_s12  ;;  %s2415_s12 = scalar_lea.vmem %s2940_s27, 256 }
 0x4cd   : > { %p2416_p10 = scmp.ne.s32.totalorder %s2940_s27, %s2415_s12  ;;  %p2423_p9 = scmp.lt.s32.totalorder %s2421_s26, %s2415_s12 }
 0x4cf   : > { %p2417_p12 = pnand %p2416_p10, %p2711_p0  ;;  %p2424_p8 = por %p2423_p9, %p2422_p1 }
 0x4d1   : > { %p2418_p7 = pneg %p2417_p12 }
 0x4d3   : > { %p2425_p2 = pnand %p2424_p8, %p2418_p7 }
 0x52d   : > { %v2178_v58 = vpop.permute.xlu1 %2177 }
 0x52e   : > { %v2180_v60 = vunpack.i.h.bf16 %v2178_v58  ;;  %v2179_v61 = vunpack.i.l.bf16 %v2178_v58 }
 0x530   : > { %v1460_v1 = vsel %vm952_vm1, %v1299_v32, %v2180_v60  ;;  %v1459_v2 = vsel %vm952_vm1, %v1296_v30, %v2179_v61 }
 0x536   : > { %v2183_v59 = vpop.permute.xlu0 %2182 }
 0x537   : > { %v2185_v0 = vunpack.i.h.bf16 %v2183_v59  ;;  %v2184_v62 = vunpack.i.l.bf16 %v2183_v59 }
 0x539   : > { %v1463_v5 = vsel %vm1461_vm4, %v1460_v1, %v2185_v0  ;;  %v1462_v6 = vsel %vm1461_vm4, %v1459_v2, %v2184_v62 }
 0x53e   : > { %v2188_v63 = vpop.permute.xlu1 %2187 }
 0x53f   : > { %v2190_v3 = vunpack.i.h.bf16 %v2188_v63  ;;  %v2189_v4 = vunpack.i.l.bf16 %v2188_v63 }
 0x541   : > { %v1466_v7 = vsel %vm1464_vm5, %v1463_v5, %v2190_v3  ;;  %v1465_v40 = vsel %vm1464_vm5, %v1462_v6, %v2189_v4 }
 0x542   : > { %v1467_v8 = vpack.c.bf16 %v1466_v7, %v1465_v40 }
 0x544   : > { %2008 = vmatmul.mubr.bf16.vlgmr.msra.gmra.mxu0 %v1467_v8 }
 0x604   : > { %v1573_v10 = vpop.f32.mrf.mxu0 }
 0x605   : > { %v1574_v11 = vadd.f32 %v1814_v9, %v1573_v10 }
 0x606   : > { %v2009_v12 = vpop.f32.mrf.mxu0 }
 0x607   : > { %v1580_v13 = vadd.f32 %v1574_v11, %v2811_v19 }
 0x608   : > { %v1576_v14 = vpop.f32.mrf.mxu0 }
 0x609   : > { %1582 = vst [vmem:[%s531_s19] sm:$0xff] %v1580_v13  ;;  %v1577_v15 = vadd.f32 %v1814_v9, %v1576_v14 }
 0x60a   : > { %v2010_v16 = vpop.f32.mrf.mxu0 }
 0x60b   : > { %v1581_v17 = vadd.f32 %v1577_v15, %v2815_v20 }
 0x60d   : > { %1583 = vst [vmem:[%s531_s19 + $0x8] sm:$0xff] %v1581_v17 }
 0x60e   : > { %2428 = shalt.err (!%p2425_p2)
}
 0x60f   : > { %s2429_s13 = scalar_lea.hbm %s2945_s28, 256  ;;  %s2433_s29 = scalar_lea.hbm %s3047_s24, 512 }
 0x610   : > { %p2430_p3 = scmp.ne.s32.totalorder %s2945_s28, %s2429_s13  ;;  %p2434_p5 = scmp.lt.s32.totalorder %s2945_s28, %s3047_s24 }
 0x611   : > { %p2435_p4 = scmp.lt.s32.totalorder %s2433_s29, %s2429_s13 }
 0x612   : > { %p2431_p13 = pnand %p2430_p3, %p2711_p0 }
 0x613   : > { %p2436_p10 = por %p2435_p4, %p2434_p5 }
 0x614   : > { %p2432_p11 = pneg %p2431_p13 }
 0x616   : > { %p2437_p12 = pnand %p2436_p10, %p2432_p11 }
 0x618   : > { %2440 = shalt.err (!%p2437_p12)
}
 0x619   : > { %s2530_s11 = smov 128   ;;  %s2531_s19 = smov 8  }
 0x61a   : > { %2031 = dma.vmem_to_hbm [thread:$0]  (%p2711_p0), %s2940_s27, 256, %s2945_s28, %s1585_s9, %s2530_s11, %s2530_s11, %s2531_s19  }
 0x61b PF: > { %s3048_s30 = sld [smem:[#allocation20_spill]]  ;;  %p3050_p7 = scmp.ge.s32.totalorder %s2511_s22, 2 }
 0x61d   : > { %p2054_p1 = pnand %p3050_p7, %p2637_p6 }
 0x61f   : > { %p2055_p9 = pneg %p2054_p1 }
 0x621   : > { %s1615_s25 = sand.u32 1, %s3048_s30  }
 0x622   : > { %s1616_s17 = scalar_lea.sflag [#allocation4], %s1615_s25 }
 0x623   : > { %2486 = dma.done.wait (%p2055_p9), %s1616_s17, 256  }
 0x624   : > { %2488 = vsyncadd (%p2055_p9), %s1616_s17, 4294967040  ;;  %s32_s22 = sadd.s32 1, %s2511_s22   ;;  %s3051_s12 = sld [smem:[#allocation21_spill]] }
 0x625   : > { %p29_p8 = scmp.ge.s32.totalorder %s32_s22, 4   ;;  %s3052_s19 = sld [smem:[#allocation25_spill]] }
 0x626   : > { %s3053_s0 = sld [smem:[#allocation23_spill]]  ;;  %s3054_s17 = smov %s2495_s18 }
 0x627   : > { %s3056_s20 = smov %s2507_s21 }
 0x628   :  { %31 = sbr.rel (!%p29_p8) target bundleno = 17 (0x11), region = 141 }
 0x62a   : > { %s3055_s18 = smov %s3051_s12 }
 0x62c   : > { %s3057_s21 = smov %s3053_s0 }
 0x62d   :  { %1621 = vsyncpa [#allocation3], 1 }
 0x62e   :  { %1623 = vsyncpa [#allocation3 + $0x1], 1 }
 0x62f   :  { %1624 = vsyncpa [#allocation6], 1 }
 0x630   :  { %1626 = vsyncpa [#allocation6 + $0x1], 1 }
 0x631   :  { %1627 = vsyncpa [#allocation9], 1 }
 0x632   :  { %1628 = vsyncpa [#allocation12], 1 }
 0x633   :  { %1629 = vsyncpa [#allocation4], 1 }
 0x634   :  { %1631 = vsyncpa [#allocation4 + $0x1], 1 }

</bundles_post_ra>
